<compile_context>
chip_gen: v5e
topology: v5e:2x2
jax: 0.10.0
libtpu: 0.0.40
codegen_flags: <defaults>
</compile_context>

<pallas_src>
import functools

import jax
import jax.numpy as jnp
from jax import lax
from jax.experimental import pallas as pl
from jax.experimental.pallas import tpu as pltpu


def _gelu_tanh(x):
    # tanh-approximate GELU, built from VPU/EUP-friendly ops.
    c = 0.7978845608028654  # sqrt(2/pi)
    return 0.5 * x * (1.0 + jnp.tanh(c * (x + 0.044715 * x * x * x)))


def _residual_dwconv_kernel(xb_ref, xt_ref, xbt_ref, w_ref, b_ref, o_ref, *,
                            TH, W, C):
    """One (batch, row-tile) block per grid step.

    xb_ref : (1, TH, W, C) current row tile of x (conv input AND residual)
    xt_ref : (1, 1,  W, C) row just above the tile (clamped at the image top)
    xbt_ref: (1, 1,  W, C) row just below the tile (clamped at the image bottom)
    w_ref  : (3, 3, C)     depthwise conv weights (per-channel)
    b_ref  : (1, C)        depthwise conv bias
    o_ref  : (1, TH, W, C) output = gelu(dwconv(x)) + x
    """
    h = pl.program_id(1)
    n_h = pl.num_programs(1)

    body = xb_ref[0].astype(jnp.float32)                 # (TH, W, C)
    top = xt_ref[0].astype(jnp.float32)                  # (1, W, C)
    bot = xbt_ref[0].astype(jnp.float32)                 # (1, W, C)
    # Halo rows are clamped in-bounds by their index_map; zero them at the true
    # image border so they act as the conv's zero padding.
    top = top * jnp.where(h > 0, 1.0, 0.0)
    bot = bot * jnp.where(h < n_h - 1, 1.0, 0.0)

    # Rows r-1 .. r+TH of the zero-padded image (concat along the leading dim).
    rows = jnp.concatenate([top, body, bot], axis=0)     # (TH+2, W, C)

    # Horizontal neighbours via XLU rolls along the sublane (W) axis; the single
    # wrapped border column is masked to zero (1-wide halo, shift 1 => safe).
    col = lax.broadcasted_iota(jnp.int32, (1, W, 1), 1)
    mask_l = (col > 0).astype(jnp.float32)               # kills column 0
    mask_r = (col < W - 1).astype(jnp.float32)           # kills column W-1
    rows_l = pltpu.roll(rows, 1, 1) * mask_l             # x[.., j-1, :]
    rows_r = pltpu.roll(rows, W - 1, 1) * mask_r         # x[.., j+1, :]

    w = w_ref[...].astype(jnp.float32)                   # (3, 3, C), loaded once
    bias = b_ref[...].astype(jnp.float32)                # (1, C)
    acc = jnp.broadcast_to(bias, (TH, W, C))             # bias-initialized acc

    # 3x3 depthwise conv: 9 FMAs; vertical taps are cheap leading-axis slices.
    for ki in range(3):
        acc = acc + rows_l[ki:ki + TH] * w[ki, 0]
        acc = acc + rows[ki:ki + TH] * w[ki, 1]
        acc = acc + rows_r[ki:ki + TH] * w[ki, 2]

    o_ref[0] = (_gelu_tanh(acc) + body).astype(o_ref.dtype)   # fused residual add


def residual_forward(x_nchw, w, b, *, tile_h=8):
    """x_nchw: (N, C, H, W).  Returns fn(x) + x in NCHW."""
    N, C, H, W = x_nchw.shape
    x = jnp.transpose(x_nchw, (0, 2, 3, 1))              # NCHW -> NHWC (C on lanes)
    b2 = b.reshape(1, C)

    # Row-tile height: largest divisor of H not exceeding tile_h.
    TH = min(tile_h, H)
    while H % TH:
        TH -= 1
    n_h = H // TH

    kernel = functools.partial(_residual_dwconv_kernel, TH=TH, W=W, C=C)

    body_spec = pl.BlockSpec((1, TH, W, C), lambda n, h: (n, h, 0, 0))
    # Halo rows: block size 1 along H, so the index_map returns a row index
    # (clamped in-bounds; masked inside the kernel at the true border).
    top_spec = pl.BlockSpec(
        (1, 1, W, C), lambda n, h: (n, jnp.maximum(h * TH - 1, 0), 0, 0))
    bot_spec = pl.BlockSpec(
        (1, 1, W, C), lambda n, h: (n, jnp.minimum(h * TH + TH, H - 1), 0, 0))

    elems = N * H * W * C
    cost = pl.CostEstimate(
        flops=28 * elems,                 # 9 conv FMAs + GELU polynomial + residual
        transcendentals=elems,            # one tanh per element
        bytes_accessed=2 * elems * x.dtype.itemsize)

    out = pl.pallas_call(
        kernel,
        out_shape=jax.ShapeDtypeStruct((N, H, W, C), x.dtype),
        grid_spec=pltpu.PrefetchScalarGridSpec(
            num_scalar_prefetch=0,
            grid=(N, n_h),
            in_specs=[
                body_spec,
                top_spec,
                bot_spec,
                pl.BlockSpec((3, 3, C), lambda n, h: (0, 0, 0)),
                pl.BlockSpec((1, C), lambda n, h: (0, 0)),
            ],
            out_specs=pl.BlockSpec((1, TH, W, C), lambda n, h: (n, h, 0, 0)),
        ),
        compiler_params=pltpu.CompilerParams(
            dimension_semantics=("parallel", "parallel")),
        cost_estimate=cost,
    )(x, x, x, w, b2)

    return jnp.transpose(out, (0, 3, 1, 2))              # NHWC -> NCHW


def residual_reference(x_nchw, w, b):
    """Pure-JAX reference: depthwise 3x3 conv + GELU(tanh) + residual."""
    N, C, H, W = x_nchw.shape
    x = jnp.transpose(x_nchw, (0, 2, 3, 1))
    rhs = w.reshape(3, 3, 1, C)                          # HWIO, groups=C
    y = jax.lax.conv_general_dilated(
        x.astype(jnp.float32), rhs.astype(jnp.float32),
        window_strides=(1, 1), padding="SAME",
        dimension_numbers=("NHWC", "HWIO", "NHWC"),
        feature_group_count=C)
    y = y + b.reshape(1, 1, 1, C)
    y = _gelu_tanh(y) + x.astype(jnp.float32)
    return jnp.transpose(y.astype(x_nchw.dtype), (0, 3, 1, 2))


if __name__ == "__main__":
    key = jax.random.PRNGKey(0)
    # C=128 keeps the channel (lane) axis dense; spatial/batch kept small.
    N, C, H, W = 2, 128, 16, 16
    kx, kw, kb = jax.random.split(key, 3)

    x = jax.random.normal(kx, (N, C, H, W), dtype=jnp.float32)
    # Deterministic parameter init (depthwise 3x3 conv weight + bias).
    w = 0.1 * jax.random.normal(kw, (3, 3, C), dtype=jnp.float32)
    b = 0.1 * jax.random.normal(kb, (C,), dtype=jnp.float32)

    out = jax.block_until_ready(residual_forward(x, w, b))
    ref = jax.block_until_ready(residual_reference(x, w, b))

    assert out.shape == (N, C, H, W)
    assert jnp.allclose(out, ref, atol=1e-4, rtol=1e-4), "mismatch vs reference"
    print("KERNEL_OK")
</pallas_src>

<mosaic_0001>
module attributes {stable_mosaic.version = 11 : i64} {
  func.func @_residual_dwconv_kernel(%arg0: i32, %arg1: i32, %arg2: memref<1x8x16x128xf32, #tpu.memory_space<vmem>>, %arg3: memref<1x1x16x128xf32, #tpu.memory_space<vmem>>, %arg4: memref<1x1x16x128xf32, #tpu.memory_space<vmem>>, %arg5: memref<3x3x128xf32, #tpu.memory_space<vmem>>, %arg6: memref<1x128xf32, #tpu.memory_space<vmem>>, %arg7: memref<1x8x16x128xf32, #tpu.memory_space<vmem>>) attributes {dimension_semantics = [#tpu.dimension_semantics<parallel>, #tpu.dimension_semantics<parallel>], iteration_bounds = array<i64: 2, 2>, scalar_prefetch = 0 : i64, scratch_operands = 0 : i64, tpu.core_type = #tpu.core_type<tc>, window_params = [{transform_indices = @transform_0, window_bounds = array<i64: 1, 8, 16, 128>}, {transform_indices = @transform_1, window_bounds = array<i64: 1, 1, 16, 128>}, {transform_indices = @transform_2, window_bounds = array<i64: 1, 1, 16, 128>}, {pipeline_mode = #tpu.pipeline_mode<synchronous>, transform_indices = @transform_3, window_bounds = array<i64: 3, 3, 128>}, {pipeline_mode = #tpu.pipeline_mode<synchronous>, transform_indices = @transform_4, window_bounds = array<i64: 1, 128>}, {transform_indices = @transform_5, window_bounds = array<i64: 1, 8, 16, 128>}]} {
    %c0 = arith.constant 0 : index
    %c0_0 = arith.constant 0 : index
    %c0_1 = arith.constant 0 : index
    %c0_2 = arith.constant 0 : index
    %0 = vector.load %arg2[%c0, %c0_0, %c0_1, %c0_2] : memref<1x8x16x128xf32, #tpu.memory_space<vmem>>, vector<1x8x16x128xf32>
    %1 = vector.shape_cast %0 : vector<1x8x16x128xf32> to vector<8x16x128xf32>
    %c0_3 = arith.constant 0 : index
    %c0_4 = arith.constant 0 : index
    %c0_5 = arith.constant 0 : index
    %c0_6 = arith.constant 0 : index
    %2 = vector.load %arg3[%c0_3, %c0_4, %c0_5, %c0_6] : memref<1x1x16x128xf32, #tpu.memory_space<vmem>>, vector<1x1x16x128xf32>
    %3 = vector.shape_cast %2 : vector<1x1x16x128xf32> to vector<1x16x128xf32>
    %c0_7 = arith.constant 0 : index
    %c0_8 = arith.constant 0 : index
    %c0_9 = arith.constant 0 : index
    %c0_10 = arith.constant 0 : index
    %4 = vector.load %arg4[%c0_7, %c0_8, %c0_9, %c0_10] : memref<1x1x16x128xf32, #tpu.memory_space<vmem>>, vector<1x1x16x128xf32>
    %5 = vector.shape_cast %4 : vector<1x1x16x128xf32> to vector<1x16x128xf32>
    %c0_i32 = arith.constant 0 : i32
    %6 = arith.cmpi sgt, %arg1, %c0_i32 : i32
    %cst = arith.constant 1.000000e+00 : f32
    %cst_11 = arith.constant 0.000000e+00 : f32
    %7 = arith.select %6, %cst, %cst_11 : f32
    %8 = vector.broadcast %7 : f32 to vector<1x16x128xf32>
    %9 = arith.mulf %3, %8 : vector<1x16x128xf32>
    %c1_i32 = arith.constant 1 : i32
    %10 = arith.cmpi slt, %arg1, %c1_i32 : i32
    %cst_12 = arith.constant 1.000000e+00 : f32
    %cst_13 = arith.constant 0.000000e+00 : f32
    %11 = arith.select %10, %cst_12, %cst_13 : f32
    %12 = vector.broadcast %11 : f32 to vector<1x16x128xf32>
    %13 = arith.mulf %5, %12 : vector<1x16x128xf32>
    %14 = tpu.concatenate %9, %1, %13 in 0 : vector<1x16x128xf32>, vector<8x16x128xf32>, vector<1x16x128xf32> -> vector<10x16x128xf32>
    %15 = tpu.iota {dimensions = array<i32: 1>} : vector<1x16x1xi32>
    %c0_i32_14 = arith.constant 0 : i32
    %16 = vector.broadcast %c0_i32_14 : i32 to vector<1x16x1xi32>
    %17 = arith.cmpi sgt, %15, %16 : vector<1x16x1xi32>
    %18 = arith.extui %17 : vector<1x16x1xi1> to vector<1x16x1xi32>
    %19 = arith.sitofp %18 : vector<1x16x1xi32> to vector<1x16x1xf32>
    %c15_i32 = arith.constant 15 : i32
    %20 = vector.broadcast %c15_i32 : i32 to vector<1x16x1xi32>
    %21 = arith.cmpi slt, %15, %20 : vector<1x16x1xi32>
    %22 = arith.extui %21 : vector<1x16x1xi1> to vector<1x16x1xi32>
    %23 = arith.sitofp %22 : vector<1x16x1xi32> to vector<1x16x1xf32>
    %c1_i32_15 = arith.constant 1 : i32
    %24 = tpu.dynamic_rotate %14 by %c1_i32_15 dim 1 : vector<10x16x128xf32>, i32 -> vector<10x16x128xf32>
    %25 = vector.broadcast %19 : vector<1x16x1xf32> to vector<10x16x128xf32>
    %26 = arith.mulf %24, %25 : vector<10x16x128xf32>
    %c15_i32_16 = arith.constant 15 : i32
    %27 = tpu.dynamic_rotate %14 by %c15_i32_16 dim 1 : vector<10x16x128xf32>, i32 -> vector<10x16x128xf32>
    %28 = vector.broadcast %23 : vector<1x16x1xf32> to vector<10x16x128xf32>
    %29 = arith.mulf %27, %28 : vector<10x16x128xf32>
    %c0_17 = arith.constant 0 : index
    %c0_18 = arith.constant 0 : index
    %c0_19 = arith.constant 0 : index
    %30 = vector.load %arg5[%c0_17, %c0_18, %c0_19] : memref<3x3x128xf32, #tpu.memory_space<vmem>>, vector<3x3x128xf32>
    %c0_20 = arith.constant 0 : index
    %c0_21 = arith.constant 0 : index
    %31 = vector.load %arg6[%c0_20, %c0_21] : memref<1x128xf32, #tpu.memory_space<vmem>>, vector<1x128xf32>
    %32 = vector.shape_cast %31 : vector<1x128xf32> to vector<1x1x128xf32>
    %33 = vector.broadcast %32 : vector<1x1x128xf32> to vector<8x16x128xf32>
    %34 = vector.extract_strided_slice %26 {offsets = [0, 0, 0], sizes = [8, 16, 128], strides = [1, 1, 1]} : vector<10x16x128xf32> to vector<8x16x128xf32>
    %35 = vector.extract_strided_slice %30 {offsets = [0, 0, 0], sizes = [1, 1, 128], strides = [1, 1, 1]} : vector<3x3x128xf32> to vector<1x1x128xf32>
    %36 = vector.shape_cast %35 : vector<1x1x128xf32> to vector<128xf32>
    %37 = vector.shape_cast %36 : vector<128xf32> to vector<1x1x128xf32>
    %38 = vector.broadcast %37 : vector<1x1x128xf32> to vector<8x16x128xf32>
    %39 = arith.mulf %34, %38 : vector<8x16x128xf32>
    %40 = arith.addf %33, %39 : vector<8x16x128xf32>
    %41 = vector.extract_strided_slice %14 {offsets = [0, 0, 0], sizes = [8, 16, 128], strides = [1, 1, 1]} : vector<10x16x128xf32> to vector<8x16x128xf32>
    %42 = vector.extract_strided_slice %30 {offsets = [0, 1, 0], sizes = [1, 1, 128], strides = [1, 1, 1]} : vector<3x3x128xf32> to vector<1x1x128xf32>
    %43 = vector.shape_cast %42 : vector<1x1x128xf32> to vector<128xf32>
    %44 = vector.shape_cast %43 : vector<128xf32> to vector<1x1x128xf32>
    %45 = vector.broadcast %44 : vector<1x1x128xf32> to vector<8x16x128xf32>
    %46 = arith.mulf %41, %45 : vector<8x16x128xf32>
    %47 = arith.addf %40, %46 : vector<8x16x128xf32>
    %48 = vector.extract_strided_slice %29 {offsets = [0, 0, 0], sizes = [8, 16, 128], strides = [1, 1, 1]} : vector<10x16x128xf32> to vector<8x16x128xf32>
    %49 = vector.extract_strided_slice %30 {offsets = [0, 2, 0], sizes = [1, 1, 128], strides = [1, 1, 1]} : vector<3x3x128xf32> to vector<1x1x128xf32>
    %50 = vector.shape_cast %49 : vector<1x1x128xf32> to vector<128xf32>
    %51 = vector.shape_cast %50 : vector<128xf32> to vector<1x1x128xf32>
    %52 = vector.broadcast %51 : vector<1x1x128xf32> to vector<8x16x128xf32>
    %53 = arith.mulf %48, %52 : vector<8x16x128xf32>
    %54 = arith.addf %47, %53 : vector<8x16x128xf32>
    %55 = vector.extract_strided_slice %26 {offsets = [1, 0, 0], sizes = [8, 16, 128], strides = [1, 1, 1]} : vector<10x16x128xf32> to vector<8x16x128xf32>
    %56 = vector.extract_strided_slice %30 {offsets = [1, 0, 0], sizes = [1, 1, 128], strides = [1, 1, 1]} : vector<3x3x128xf32> to vector<1x1x128xf32>
    %57 = vector.shape_cast %56 : vector<1x1x128xf32> to vector<128xf32>
    %58 = vector.shape_cast %57 : vector<128xf32> to vector<1x1x128xf32>
    %59 = vector.broadcast %58 : vector<1x1x128xf32> to vector<8x16x128xf32>
    %60 = arith.mulf %55, %59 : vector<8x16x128xf32>
    %61 = arith.addf %54, %60 : vector<8x16x128xf32>
    %62 = vector.extract_strided_slice %14 {offsets = [1, 0, 0], sizes = [8, 16, 128], strides = [1, 1, 1]} : vector<10x16x128xf32> to vector<8x16x128xf32>
    %63 = vector.extract_strided_slice %30 {offsets = [1, 1, 0], sizes = [1, 1, 128], strides = [1, 1, 1]} : vector<3x3x128xf32> to vector<1x1x128xf32>
    %64 = vector.shape_cast %63 : vector<1x1x128xf32> to vector<128xf32>
    %65 = vector.shape_cast %64 : vector<128xf32> to vector<1x1x128xf32>
    %66 = vector.broadcast %65 : vector<1x1x128xf32> to vector<8x16x128xf32>
    %67 = arith.mulf %62, %66 : vector<8x16x128xf32>
    %68 = arith.addf %61, %67 : vector<8x16x128xf32>
    %69 = vector.extract_strided_slice %29 {offsets = [1, 0, 0], sizes = [8, 16, 128], strides = [1, 1, 1]} : vector<10x16x128xf32> to vector<8x16x128xf32>
    %70 = vector.extract_strided_slice %30 {offsets = [1, 2, 0], sizes = [1, 1, 128], strides = [1, 1, 1]} : vector<3x3x128xf32> to vector<1x1x128xf32>
    %71 = vector.shape_cast %70 : vector<1x1x128xf32> to vector<128xf32>
    %72 = vector.shape_cast %71 : vector<128xf32> to vector<1x1x128xf32>
    %73 = vector.broadcast %72 : vector<1x1x128xf32> to vector<8x16x128xf32>
    %74 = arith.mulf %69, %73 : vector<8x16x128xf32>
    %75 = arith.addf %68, %74 : vector<8x16x128xf32>
    %76 = vector.extract_strided_slice %26 {offsets = [2, 0, 0], sizes = [8, 16, 128], strides = [1, 1, 1]} : vector<10x16x128xf32> to vector<8x16x128xf32>
    %77 = vector.extract_strided_slice %30 {offsets = [2, 0, 0], sizes = [1, 1, 128], strides = [1, 1, 1]} : vector<3x3x128xf32> to vector<1x1x128xf32>
    %78 = vector.shape_cast %77 : vector<1x1x128xf32> to vector<128xf32>
    %79 = vector.shape_cast %78 : vector<128xf32> to vector<1x1x128xf32>
    %80 = vector.broadcast %79 : vector<1x1x128xf32> to vector<8x16x128xf32>
    %81 = arith.mulf %76, %80 : vector<8x16x128xf32>
    %82 = arith.addf %75, %81 : vector<8x16x128xf32>
    %83 = vector.extract_strided_slice %14 {offsets = [2, 0, 0], sizes = [8, 16, 128], strides = [1, 1, 1]} : vector<10x16x128xf32> to vector<8x16x128xf32>
    %84 = vector.extract_strided_slice %30 {offsets = [2, 1, 0], sizes = [1, 1, 128], strides = [1, 1, 1]} : vector<3x3x128xf32> to vector<1x1x128xf32>
    %85 = vector.shape_cast %84 : vector<1x1x128xf32> to vector<128xf32>
    %86 = vector.shape_cast %85 : vector<128xf32> to vector<1x1x128xf32>
    %87 = vector.broadcast %86 : vector<1x1x128xf32> to vector<8x16x128xf32>
    %88 = arith.mulf %83, %87 : vector<8x16x128xf32>
    %89 = arith.addf %82, %88 : vector<8x16x128xf32>
    %90 = vector.extract_strided_slice %29 {offsets = [2, 0, 0], sizes = [8, 16, 128], strides = [1, 1, 1]} : vector<10x16x128xf32> to vector<8x16x128xf32>
    %91 = vector.extract_strided_slice %30 {offsets = [2, 2, 0], sizes = [1, 1, 128], strides = [1, 1, 1]} : vector<3x3x128xf32> to vector<1x1x128xf32>
    %92 = vector.shape_cast %91 : vector<1x1x128xf32> to vector<128xf32>
    %93 = vector.shape_cast %92 : vector<128xf32> to vector<1x1x128xf32>
    %94 = vector.broadcast %93 : vector<1x1x128xf32> to vector<8x16x128xf32>
    %95 = arith.mulf %90, %94 : vector<8x16x128xf32>
    %96 = arith.addf %89, %95 : vector<8x16x128xf32>
    %cst_22 = arith.constant 5.000000e-01 : f32
    %97 = vector.broadcast %cst_22 : f32 to vector<8x16x128xf32>
    %98 = arith.mulf %97, %96 : vector<8x16x128xf32>
    %cst_23 = arith.constant 4.471500e-02 : f32
    %99 = vector.broadcast %cst_23 : f32 to vector<8x16x128xf32>
    %100 = arith.mulf %99, %96 : vector<8x16x128xf32>
    %101 = arith.mulf %100, %96 : vector<8x16x128xf32>
    %102 = arith.mulf %101, %96 : vector<8x16x128xf32>
    %103 = arith.addf %96, %102 : vector<8x16x128xf32>
    %cst_24 = arith.constant 0.797884583 : f32
    %104 = vector.broadcast %cst_24 : f32 to vector<8x16x128xf32>
    %105 = arith.mulf %104, %103 : vector<8x16x128xf32>
    %106 = math.tanh %105 : vector<8x16x128xf32>
    %cst_25 = arith.constant 1.000000e+00 : f32
    %107 = vector.broadcast %cst_25 : f32 to vector<8x16x128xf32>
    %108 = arith.addf %107, %106 : vector<8x16x128xf32>
    %109 = arith.mulf %98, %108 : vector<8x16x128xf32>
    %110 = arith.addf %109, %1 : vector<8x16x128xf32>
    %c0_26 = arith.constant 0 : index
    %c0_27 = arith.constant 0 : index
    %c0_28 = arith.constant 0 : index
    %c0_29 = arith.constant 0 : index
    %111 = vector.load %arg7[%c0_26, %c0_27, %c0_28, %c0_29] : memref<1x8x16x128xf32, #tpu.memory_space<vmem>>, vector<1x8x16x128xf32>
    %112 = vector.shape_cast %111 : vector<1x8x16x128xf32> to vector<8x16x128xf32>
    %113 = vector.shape_cast %110 : vector<8x16x128xf32> to vector<1x8x16x128xf32>
    tpu.vector_store %arg7[%c0_26, %c0_27, %c0_28, %c0_29], %113 {strides = array<i32>} : memref<1x8x16x128xf32, #tpu.memory_space<vmem>>, vector<1x8x16x128xf32>,
    return
  }
  func.func @transform_0(%arg0: i32, %arg1: i32) -> (i32, i32, i32, i32) {
    %c0_i32 = arith.constant 0 : i32
    %c0_i32_0 = arith.constant 0 : i32
    %c0_i32_1 = arith.constant 0 : i32
    return %arg0, %arg1, %c0_i32, %c0_i32_0 : i32, i32, i32, i32
  }
  func.func @transform_1(%arg0: i32, %arg1: i32) -> (i32, i32, i32, i32) {
    %c8_i32 = arith.constant 8 : i32
    %0 = arith.muli %arg1, %c8_i32 : i32
    %c1_i32 = arith.constant 1 : i32
    %1 = arith.subi %0, %c1_i32 : i32
    %c0_i32 = arith.constant 0 : i32
    %2 = arith.maxsi %1, %c0_i32 : i32
    %c0_i32_0 = arith.constant 0 : i32
    %c0_i32_1 = arith.constant 0 : i32
    %c0_i32_2 = arith.constant 0 : i32
    return %arg0, %2, %c0_i32_0, %c0_i32_1 : i32, i32, i32, i32
  }
  func.func @transform_2(%arg0: i32, %arg1: i32) -> (i32, i32, i32, i32) {
    %c8_i32 = arith.constant 8 : i32
    %0 = arith.muli %arg1, %c8_i32 : i32
    %c8_i32_0 = arith.constant 8 : i32
    %1 = arith.addi %0, %c8_i32_0 : i32
    %c15_i32 = arith.constant 15 : i32
    %2 = arith.minsi %1, %c15_i32 : i32
    %c0_i32 = arith.constant 0 : i32
    %c0_i32_1 = arith.constant 0 : i32
    %c0_i32_2 = arith.constant 0 : i32
    return %arg0, %2, %c0_i32, %c0_i32_1 : i32, i32, i32, i32
  }
  func.func @transform_3(%arg0: i32, %arg1: i32) -> (i32, i32, i32) {
    %c0_i32 = arith.constant 0 : i32
    %c0_i32_0 = arith.constant 0 : i32
    %c0_i32_1 = arith.constant 0 : i32
    %c0_i32_2 = arith.constant 0 : i32
    return %c0_i32, %c0_i32_0, %c0_i32_1 : i32, i32, i32
  }
  func.func @transform_4(%arg0: i32, %arg1: i32) -> (i32, i32) {
    %c0_i32 = arith.constant 0 : i32
    %c0_i32_0 = arith.constant 0 : i32
    %c0_i32_1 = arith.constant 0 : i32
    return %c0_i32, %c0_i32_0 : i32, i32
  }
  func.func @transform_5(%arg0: i32, %arg1: i32) -> (i32, i32, i32, i32) {
    %c0_i32 = arith.constant 0 : i32
    %c0_i32_0 = arith.constant 0 : i32
    %c0_i32_1 = arith.constant 0 : i32
    return %arg0, %arg1, %c0_i32, %c0_i32_0 : i32, i32, i32, i32
  }
}

</mosaic_0001>

<bundles_post_ra>
// kernel: tpu_custom_call.1
= control target key start
LH: loop header
LB: loop body
LE: loop exit
PB: predicated region body
PF: predicated region fallthrough
CT: control target
= control target key end

     0   :  { %s2725_s0 = inlined_call_operand.hbm [shape: f32[2,16,16,128], index: 0, kind: input, shape index: {}]   ;;  %s2726_s1 = inlined_call_operand.hbm [shape: f32[2,16,16,128], index: 1, kind: input, shape index: {}]   ;;  %s2727_s2 = inlined_call_operand.hbm [shape: f32[2,16,16,128], index: 2, kind: input, shape index: {}]   ;;  %s2728_s3 = inlined_call_operand.hbm [shape: f32[3,3,128], index: 3, kind: input, shape index: {}]   ;;  %s2729_s4 = inlined_call_operand.vmem [shape: f32[1,128], index: 4, kind: input, shape index: {}]   ;;  %s2730_s5 = inlined_call_operand.hbm [shape: f32[2,16,16,128], index: 5, kind: output, shape index: {}]  }
   0x1   :  { %2749 = sst [smem:[#allocation31_spill]] %s2725_s0 }
   0x2   :  { %2750 = sst [smem:[#allocation32_spill]] %s2726_s1 }
   0x3   :  { %2751 = sst [smem:[#allocation33_spill]] %s2727_s2 }
   0x4   :  { %2752 = sst [smem:[#allocation34_spill]] %s2728_s3 }
   0x5   :  { %2753 = sst [smem:[#allocation35_spill]] %s2729_s4 }
   0x6   :  { %2754 = sst [smem:[#allocation36_spill]] %s2730_s5 }
   0x7   :  { %10 = vsyncpa [#allocation3], 0 }
   0x8   :  { %12 = vsyncpa [#allocation3 + $0x1], 0 }
   0x9   :  { %13 = vsyncpa [#allocation6], 0 }
   0xa   :  { %15 = vsyncpa [#allocation6 + $0x1], 0 }
   0xb   :  { %16 = vsyncpa [#allocation9], 0 }
   0xc   :  { %17 = vsyncpa [#allocation4], 0 }
   0xd   :  { %19 = vsyncpa [#allocation4 + $0x1], 0  ;;  %s1768_s18 = smov 0   ;;  %s1770_s19 = smov 0  }
   0xe   :  { %s1772_s20 = smov 0   ;;  %s1774_s21 = smov 0  }
   0xf   :  { %s1776_s22 = smov 0   ;;  %s1778_s23 = smov 0  }
  0x10   :  { %s1780_s24 = smov 0   ;;  %s1782_s25 = smov 0  }
  0x11   :  { %s1784_s26 = smov 0   ;;  %s1786_s27 = smov 0  }
  0x12   :  { %s1788_s28 = smov 0   ;;  %s1790_s29 = smov 0  }
  0x13   :  { %s1792_s30 = smov 0   ;;  %s1794_s6 = smov 0  }
  0x14 LB: > { %2755 = sst [smem:[#allocation16_spill]] %s1676_s18  ;;  %s34_s7 = sadd.s32 1, %s1720_s29  ;;  %s1728_s6 = sphi %s1794_s6, %s25_s6   ;;  %s1724_s30 = sphi %s1792_s30, %s2806_s30   ;;  %s1720_s29 = sphi %s1790_s29, %s2805_s29   ;;  %s1716_s28 = sphi %s1788_s28, %s2804_s28   ;;  %s1712_s27 = sphi %s1786_s27, %s2803_s27   ;;  %s1708_s26 = sphi %s1784_s26, %s2802_s26   ;;  %s1704_s25 = sphi %s1782_s25, %s2814_s25   ;;  %s1700_s24 = sphi %s1780_s24, %s2813_s24   ;;  %s1696_s23 = sphi %s1778_s23, %s2800_s23   ;;  %s1692_s22 = sphi %s1776_s22, %s2812_s22   ;;  %s1688_s21 = sphi %s1774_s21, %s2811_s21   ;;  %s1684_s20 = sphi %s1772_s20, %s2810_s20   ;;  %s1680_s19 = sphi %s1770_s19, %s2809_s19   ;;  %s1676_s18 = sphi %s1768_s18, %s2808_s18  }
  0x15   : > { %2756 = sst [smem:[#allocation17_spill]] %s1696_s23  ;;  %s37_s8 = sadd.s32 1, %s1724_s30 }
  0x16   : > { %2757 = sst [smem:[#allocation18_spill]] %s1700_s24  ;;  %p35_p0 = scmp.ge.s32.totalorder %s34_s7, 2 }
  0x17   : > { %2758 = sst [smem:[#allocation19_spill]] %s1708_s26  ;;  %p54_p1 = scmp.eq.s32.totalorder %s1728_s6, 0 }
  0x18   : > { %2759 = sst [smem:[#allocation20_spill]] %s1712_s27  ;;  %s1221_s9 = sshll.u32 %s1720_s29, 3 }
  0x19   : > { %2760 = sst [smem:[#allocation21_spill]] %s1716_s28  ;;  %s82_s10 = sadd.s32 1, %s1696_s23 }
  0x1a   : > { %2761 = sst [smem:[#allocation22_spill]] %s1720_s29  ;;  %s2816_s7 = smov (%p35_p0, %s34_s7), 0 }
  0x1b   : > { %2762 = sst [smem:[#allocation23_spill]] %s1724_s30  ;;  %s2818_s8 = smov (!%p35_p0, %s37_s8), %s1724_s30 }
  0x1c   : > { %2763 = sst [smem:[#allocation24_spill]] %s2816_s7  ;;  %s42_s11 = ssub.s32 %s1720_s29, %s2816_s7 }
  0x1d   : > { %s1222_s12 = sadd.s32 4294967295, %s1221_s9  ;;  %p39_p2 = scmp.ge.s32.totalorder %s2818_s8, 2 }
  0x1e   : > { %p71_p3 = scmp.gt.s32.totalorder %s1222_s12, 0  ;;  %s1223_s13 = sshll.u32 %s2816_s7, 3 }
  0x1f   : > { %p89_p4 = scmp.ne.s32.totalorder %s1696_s23, %s1692_s22  ;;  %s2820_s8 = smov (%p39_p2, %s2818_s8), 0 }
  0x20   : > { %2764 = sst [smem:[#allocation25_spill]] %s2820_s8  ;;  %s2822_s12 = smov (!%p71_p3, %s1222_s12), 0 }
  0x21   : > { %s1855_s14 = ssub.s32 %s1724_s30, %s2820_s8  ;;  %s1224_s15 = sadd.s32 4294967295, %s1223_s13 }
  0x22   : > { %2765 = sst [smem:[#allocation26_spill]] %s1855_s14  ;;  %s1858_s16 = sor.u32 %s42_s11, %s1855_s14 }
  0x23   : > { %p75_p5 = scmp.gt.s32.totalorder %s1224_s15, 0  ;;  %p44_p6 = scmp.eq.s32.totalorder %s1858_s16, 0 }
  0x24   : > { %p1863_p7 = por %p89_p4, %p54_p1  ;;  %p95_p8 = scmp.ne.s32.totalorder %s1692_s22, %s1688_s21 }
  0x25   : > { %s2824_s15 = smov (!%p75_p5, %s1224_s15), 0  ;;  %s1869_s8 = sadd.s32 8, %s1221_s9 }
  0x26   : > { %s78_s7 = ssub.s32 %s2822_s12, %s2824_s15  ;;  %p107_p9 = scmp.lt.s32.totalorder %s1869_s8, 15 }
  0x27   : > { %s79_s5 = sor.u32 %s78_s7, %s1855_s14  ;;  %s1873_s11 = sadd.s32 8, %s1223_s13 }
  0x28   : > { %p80_p10 = scmp.eq.s32.totalorder %s79_s5, 0  ;;  %p2745_p12 = scmp.lt.s32.totalorder %s1728_s6, 4 }
  0x29   : > { %s1881_s4 = sshll.u32 %s1724_s30, 5  ;;  %s267_s27 = sand.u32 1, %s1728_s6  }
  0x2a   : > { %s1878_s28 = scalar_select %p80_p10, %s1696_s23, %s82_s10  }
  0x2b   : > { %s269_s9 = sand.u32 1, %s1696_s23   ;;  %s1238_s15 = sshll.u32 %s2822_s12, 1 }
  0x2c   : > { %2767 = sst [smem:[#allocation27_spill]] %s1878_s28  ;;  %s1235_s2 = sshll.u32 %s269_s9, 4 }
  0x2d   : > { %s280_s7 = sadd.s32 %s1238_s15, %s1881_s4  ;;  %s271_s0 = scalar_lea.vmem [#allocation5], %s1235_s2 }
  0x2e   : > { %s1240_s13 = sshll.u32 %s280_s7, 3  ;;  %s285_s5 = sshll.u32 %s271_s0, 4  ;;  %s286_s5 = int_to_ptr.vmem [resolvable:$true] %s285_s5 }
  0x2f   : > { %s2768_s1 = sld [smem:[#allocation32_spill]]  ;;  %p1283_p13 = pnand %p2745_p12, %p1863_p7 }
  0x30   : > { %s1893_s9 = scalar_lea.sflag [#allocation6], %s267_s27  ;;  %s2737_s12 = smov 128  }
  0x31   : > { %s2739_s15 = smov 8   ;;  %s1900_s0 = sadd.s32 4294967295, %s1728_s6  }
  0x32   : > { %p1227_p0 = scmp.ge.s32.totalorder %s1728_s6, 1  ;;  %p60_p2 = scmp.eq.s32.totalorder %s1900_s0, 0 }
  0x33   : > { %p212_p3 = scmp.lt.s32.totalorder %s1728_s6, 5  ;;  %s2769_s3 = sld [smem:[#allocation34_spill]] }
  0x34   : > { %p1913_p4 = por %p95_p8, %p60_p2  ;;  %s1732_s17 = smov [#allocation8]  }
  0x35   : > { %s282_s10 = scalar_lea.hbm %s2768_s1, %s1240_s13  ;;  %p1917_p5 = pnand %p1227_p0, %p212_p3 }
  0x36   : > { %s283_s30 = sshll.u32 %s282_s10, 4  ;;  %s225_s21 = sshll.u32 %s1732_s17, 4  ;;  %s284_s30 = int_to_ptr.hbm [resolvable:$true] %s283_s30  ;;  %s226_s21 = int_to_ptr.vmem [resolvable:$true] %s225_s21 }
  0x37   : > { %1285 = dma.hbm_to_vmem [thread:$0]  (!%p1283_p13), %s284_s30, 256, %s286_s5, %s1893_s9, %s2737_s12, %s2737_s12, %s2739_s15  }
  0x38   : > { %p1275_p7 = pneg %p1917_p5  ;;  %s1733_s7 = smov 64  }
  0x39   : > { %s223_s27 = sshll.u32 %s2769_s3, 4  ;;  %s1734_s13 = smov 4   ;;  %s224_s27 = int_to_ptr.hbm [resolvable:$true] %s223_s27 }
  0x3a   : > { %p1276_p8 = pnand %p1275_p7, %p60_p2  ;;  %s1220_s5 = sadd.s32 4294967294, %s1728_s6  }
  0x3b   : > { %s46_s10 = sadd.s32 1, %s1708_s26  ;;  %p53_p10 = scmp.ne.s32.totalorder %s1708_s26, %s1704_s25 }
  0x3c   : > { %1278 = dma.hbm_to_vmem [thread:$0]  (!%p1276_p8), %s224_s27, 192, %s226_s21, [#allocation9], %s1733_s7, %s1733_s7, %s1734_s13  }
  0x3d   : > { %s1932_s2 = scalar_select %p44_p6, %s1708_s26, %s46_s10  }
  0x3e   : > { %p1936_p13 = por %p54_p1, %p53_p10  ;;  %p59_p0 = scmp.ne.s32.totalorder %s1704_s25, %s1700_s24 }
  0x3f   : > { %2772 = sst [smem:[#allocation28_spill]] %s1932_s2  ;;  %p199_p3 = scmp.eq.s32.totalorder %s1900_s0, 3 }
  0x40   : > { %p205_p7 = scmp.eq.s32.totalorder %s1220_s5, 3  ;;  %p1945_p11 = por %p60_p2, %p59_p0 }
  0x41   : > { %s242_s27 = sand.u32 1, %s1708_s26   ;;  %p1950_p8 = por %p199_p3, %p53_p10 }
  0x42   : > { %p1954_p6 = por %p205_p7, %p59_p0  ;;  %s1230_s7 = sshll.u32 %s242_s27, 7 }
  0x43   : > { %s2775_s16 = scalar_select %p1950_p8, 1, 0 }
  0x44   : > { %s2777_s21 = scalar_select %p1954_p6, 1, 0 }
  0x45   : > { %2776 = sst [smem:[#allocation29_spill]] %s2775_s16  ;;  %s1261_s13 = sshll.u32 %s1720_s29, 4 }
  0x46   : > { %2778 = sst [smem:[#allocation30_spill]] %s2777_s21  ;;  %s252_s10 = sadd.s32 %s1261_s13, %s1881_s4 }
  0x47   : > { %s2779_s5 = sld [smem:[#allocation16_spill]]  ;;  %s246_s12 = scalar_lea.vmem [#allocation2], %s1230_s7 }
  0x48   : > { %s257_s15 = sshll.u32 %s246_s12, 4  ;;  %s2780_s1 = sld [smem:[#allocation26_spill]]  ;;  %s258_s15 = int_to_ptr.vmem [resolvable:$true] %s257_s15 }
  0x49   : > { %s1234_s3 = sshll.u32 %s252_s10, 3  ;;  %s2781_s28 = sld [smem:[#allocation31_spill]] }
  0x4a   : > { %p1280_p10 = pnand %p2745_p12, %p1936_p13  ;;  %s243_s29 = scalar_lea.sflag [#allocation3], %s242_s27 }
  0x4b   : > { %s2782_s13 = smov 8   ;;  %s2783_s7 = smov 128  }
  0x4c   : > { %s118_s12 = sadd.s32 1, %s1684_s20  ;;  %s2826_s8 = smov (!%p107_p9, %s1869_s8), 15 }
  0x4d   : > { %p2784_p0 = scmp.lt.s32.totalorder %s1873_s11, 15  ;;  %p125_p3 = scmp.ne.s32.totalorder %s1684_s20, %s1680_s19 }
  0x4e   : > { %p131_p7 = scmp.ne.s32.totalorder %s1680_s19, %s2779_s5  ;;  %s297_s26 = sand.u32 1, %s1684_s20  }
  0x4f   : > { %s254_s23 = scalar_lea.hbm %s2781_s28, %s1234_s3  ;;  %s2828_s11 = smov (!%p2784_p0, %s1873_s11), 15 }
  0x50   : > { %s255_s21 = sshll.u32 %s254_s23, 4  ;;  %s114_s3 = ssub.s32 %s2826_s8, %s2828_s11  ;;  %s256_s21 = int_to_ptr.hbm [resolvable:$true] %s255_s21 }
  0x51   : > { %1282 = dma.hbm_to_vmem [thread:$0]  (!%p1280_p10), %s256_s21, 2048, %s258_s15, %s243_s29, %s2783_s7, %s2783_s7, %s2782_s13  }
  0x52   : > { %s115_s28 = sor.u32 %s114_s3, %s2780_s1  ;;  %p1985_p13 = por %p125_p3, %p54_p1 }
  0x53   : > { %p116_p12 = scmp.eq.s32.totalorder %s115_s28, 0  ;;  %p1991_p10 = por %p131_p7, %p60_p2 }
  0x54   : > { %s1241_s15 = sshll.u32 %s297_s26, 4  ;;  %s1243_s2 = sshll.u32 %s2826_s8, 1 }
  0x55   : > { %s1996_s18 = scalar_select %p116_p12, %s1684_s20, %s118_s12  }
  0x56   : > { %s308_s11 = sadd.s32 %s1243_s2, %s1881_s4  ;;  %s299_s1 = scalar_lea.vmem [#allocation7], %s1241_s15 }
  0x57   : > { %s1245_s27 = sshll.u32 %s308_s11, 3  ;;  %s313_s21 = sshll.u32 %s299_s1, 4  ;;  %s314_s21 = int_to_ptr.vmem [resolvable:$true] %s313_s21 }
  0x58   : > { %s2787_s3 = sld [smem:[#allocation33_spill]]  ;;  %p2788_p1 = scmp.lt.s32.totalorder %s1728_s6, 4 }
  0x59   : > { %s2013_s4 = sand.u32 (!%p1917_p5), 1, %s1704_s25  }
  0x5a   : > { %p1286_p9 = pnand %p2788_p1, %p1985_p13  ;;  %s1247_s8 = sshll.u32 (!%p1917_p5), %s2013_s4, 7 }
  0x5b   : > { %s2019_s12 = scalar_lea.vmem (!%p1917_p5), [#allocation2], %s1247_s8 }
  0x5c   : > { %325 = sbr.rel (%p1917_p5) target bundleno = 282 (0x11a), region = 40 }
  0x5e   : > { %s310_s24 = scalar_lea.hbm %s2787_s3, %s1245_s27 }
  0x5f   : > { %s311_s16 = sshll.u32 %s310_s24, 4  ;;  %s328_s24 = scalar_lea.sflag (!%p1917_p5), [#allocation3], %s2013_s4  ;;  %s312_s16 = int_to_ptr.hbm [resolvable:$true] %s311_s16 }
  0x60   : > { %1288 = dma.hbm_to_vmem [thread:$0]  (!%p1286_p9), %s312_s16, 256, %s314_s21, %s1893_s9, %s2783_s7, %s2783_s7, %s2782_s13  }
  0x61   : > { %1655 = dma.done.wait (%p1945_p11), %s328_s24, 2048  }
  0x62   : > { %1657 = vsyncadd (%p1945_p11), %s328_s24, 4294965248  ;;  %s337_s9 = sand.u32 1, %s1900_s0   ;;  %s339_s14 = sand.u32 1, %s1692_s22  }
  0x63   : > { %s1248_s16 = sshll.u32 %s339_s14, 4  ;;  %s338_s13 = scalar_lea.sflag [#allocation6], %s337_s9 }
  0x64   : > { %s341_s7 = scalar_lea.vmem [#allocation5], %s1248_s16 }
  0x65   : > { %1659 = dma.done.wait (%p1913_p4), %s338_s13, 256  }
  0x66   : > { %1661 = vsyncadd (%p1913_p4), %s338_s13, 4294967040  ;;  %s349_s26 = sand.u32 1, %s1680_s19  }
  0x67   : > { %s2032_s28 = sshll.u32 %s349_s26, 4 }
  0x68   : > { %s351_s17 = scalar_lea.vmem [#allocation7], %s2032_s28 }
  0x69   : > { %1663 = dma.done.wait (%p1991_p10), %s338_s13, 256  }
  0x6a   : > { %1665 = vsyncadd (%p1991_p10), %s338_s13, 4294967040 }
  0x6b   : > { %1667 = dma.done.wait (%p60_p2), [#allocation9], 192  }
  0x6c   : > { %1669 = vsyncadd (%p60_p2), [#allocation9], 4294967104  ;;  %s2789_s30 = sld [smem:[#allocation20_spill]]  ;;  %v434_v0 = vlaneseq  ;;  %v2049_v4 = vld [vmem:[%s2019_s12] sm:$0xff]  ;;  %v2052_v5 = vld [vmem:[%s2019_s12 + $0x8] sm:$0xff]  ;;  %v1735_v15 = vmov 0.0  }
  0x6d   : > { %v2055_v6 = vld [vmem:[%s2019_s12 + $0x10] sm:$0xff]  ;;  %v2059_v7 = vld [vmem:[%s2019_s12 + $0x18] sm:$0xff]  ;;  %v450_v10 = vrot.slane %v2049_v4, 7  ;;  %v460_v12 = vrot.slane %v2052_v5, 7  ;;  %v511_v19 = vrot.slane %v2049_v4, 1  ;;  %v521_v20 = vrot.slane %v2052_v5, 1 }
  0x6e   : > { %v2044_v1 = vshrl.u32 %v434_v0, 7  ;;  %v420_v8 = vld [vmem:[%s341_s7] sm:$0xff]  ;;  %v421_v9 = vld [vmem:[%s341_s7 + $0x8] sm:$0xff]  ;;  %v451_v11 = vrot.slane %v2055_v6, 7  ;;  %v461_v17 = vrot.slane %v2059_v7, 7  ;;  %v512_v27 = vrot.slane %v2055_v6, 1 }
  0x6f   : > { %v571_v29 = vld [vmem:[#allocation8] sm:$0x7]  ;;  %v572_v34 = vld [vmem:[#allocation8 + $0x4] sm:$0x7]  ;;  %v522_v36 = vrot.slane %v2059_v7, 1  ;;  %s2790_s15 = sld [smem:[#allocation35_spill]] }
  0x70   : > { %v436_v2 = vadd.s32 8, %v2044_v1  ;;  %vm437_vm0 = vcmp.gt.s32.totalorder %v2044_v1, 0  ;;  %vm469_vm2 = vcmp.lt.s32.totalorder %v2044_v1, 1  ;;  %vm530_vm3 = vcmp.lt.s32.totalorder %v2044_v1, 7  ;;  %s2316_s2 = scalar_lea.vmem [#allocation10], %s1247_s8  ;;  %s2791_s27 = sld [smem:[#allocation21_spill]] }
  0x71   : > { %v2064_v16 = vsel %vm437_vm0, 1.0, %v1735_v15  ;;  %v481_v18 = vsel %vm469_vm2, %v460_v12, %v450_v10  ;;  %v482_v24 = vsel %vm469_vm2, %v461_v17, %v451_v11  ;;  %v471_v25 = vsel %vm469_vm2, %v450_v10, %v460_v12  ;;  %s2792_s24 = sld [smem:[#allocation36_spill]]  ;;  %s1067_s16 = sshll.u32 %s2316_s2, 4  ;;  %s1068_s16 = int_to_ptr.vmem [resolvable:$true] %s1067_s16 }
  0x72   : > { %p424_p11 = scmp.gt.s32.totalorder %s2789_s30, 0  ;;  %vm444_vm1 = vcmp.lt.s32.totalorder %v436_v2, 15  ;;  %v492_v32 = vmul.f32 %v2064_v16, %v481_v18  ;;  %v2090_v33 = vmul.f32 %v2064_v16, %v482_v24  ;;  %v542_v38 = vsel %vm530_vm3, %v521_v20, %v511_v19  ;;  %p429_p12 = scmp.lt.s32.totalorder %s2789_s30, 1 }
  0x73   : > { %v2073_v21 = vsel %vm444_vm1, 1.0, %v1735_v15  ;;  %v532_v40 = vsel %vm530_vm3, %v511_v19, %v521_v20  ;;  %v2108_v43 = vperm.slane %v571_v29, 0  ;;  %v2111_v45 = vperm.slane %v571_v29, 1  ;;  %v573_v19 = vld [vmem:[#allocation8 + $0x8] sm:$0x7]  ;;  %s1262_s1 = sshll.u32 %s2789_s30, 4 }
  0x74   : > { %s425_s23 = scalar_select %p424_p11, 1.0, 0.0  ;;  %v554_v44 = vmul.f32 %v2073_v21, %v542_v38  ;;  %v2113_v46 = vperm.slane %v571_v29, 2  ;;  %v2115_v47 = vperm.slane %v572_v34, 0  ;;  %v2125_v55 = vperm.slane %v572_v34, 1 }
  0x75   : > { %v2106_v42 = vld [vmem:[%s2790_s15] ss:$0 sm:$0xff]  ;;  %v581_v50 = vmul.f32 %v2108_v43, %v492_v32  ;;  %v582_v51 = vmul.f32 %v2108_v43, %v471_v25  ;;  %v583_v52 = vmul.f32 %v2108_v43, %v2090_v33  ;;  %v614_v61 = vmul.f32 %v2111_v45, %v2049_v4  ;;  %s430_s11 = scalar_select %p429_p12, 1.0, 0.0 }
  0x76   : > { %v426_v3 = vstv %s425_s23  ;;  %v615_v62 = vmul.f32 %v2111_v45, %v2052_v5  ;;  %v616_v63 = vmul.f32 %v2111_v45, %v2055_v6  ;;  %v647_v12 = vmul.f32 %v2113_v46, %v532_v40  ;;  %s1257_s21 = sshll.u32 %s2791_s27, 5  ;;  %s1052_s7 = scalar_lea.sflag [#allocation4], %s2013_s4 }
  0x77   : > { %v427_v13 = vmul.f32 %v426_v3, %v420_v8  ;;  %v428_v14 = vmul.f32 %v426_v3, %v421_v9  ;;  %v597_v58 = vadd.f32 %v2106_v42, %v581_v50  ;;  %v598_v59 = vadd.f32 %v2106_v42, %v582_v51  ;;  %s1064_s5 = sadd.s32 %s1262_s1, %s1257_s21 }
  0x78   : > { %v599_v60 = vadd.f32 %v2106_v42, %v583_v52  ;;  %v533_v9 = vsel %vm530_vm3, %v512_v27, %v522_v36  ;;  %v680_v24 = vmul.f32 %v2115_v47, %v2090_v33  ;;  %v711_v29 = vmul.f32 %v2125_v55, %v2049_v4  ;;  %s1258_s10 = sshll.u32 %s1064_s5, 3 }
  0x79   : > { %v449_v22 = vrot.slane %v427_v13, 7  ;;  %v459_v23 = vrot.slane %v428_v14, 7  ;;  %v510_v26 = vrot.slane %v427_v13, 1  ;;  %v520_v28 = vrot.slane %v428_v14, 1  ;;  %s1066_s9 = scalar_lea.hbm %s2792_s24, %s1258_s10 }
  0x7a   : > { %v612_v53 = vmul.f32 %v2111_v45, %v427_v13  ;;  %v613_v54 = vmul.f32 %v2111_v45, %v428_v14  ;;  %v630_v10 = vadd.f32 %v614_v61, %v597_v58  ;;  %v631_v13 = vadd.f32 %v615_v62, %v598_v59  ;;  %s1069_s13 = sshll.u32 %s1066_s9, 4  ;;  %s1070_s13 = int_to_ptr.hbm [resolvable:$true] %s1069_s13 }
  0x7b   : > { %v470_v30 = vsel %vm469_vm2, %v449_v22, %v459_v23  ;;  %v480_v31 = vsel %vm469_vm2, %v459_v23, %v449_v22  ;;  %v541_v37 = vsel %vm530_vm3, %v520_v28, %v510_v26  ;;  %v531_v39 = vsel %vm530_vm3, %v510_v26, %v520_v28  ;;  %s1584_s26 = sshra.s32 %s1070_s13, 4  ;;  %s1585_s26 = int_to_ptr.hbm [resolvable:$true] %s1584_s26 }
  0x7c   : > { %v490_v35 = vmul.f32 %v2064_v16, %v480_v31  ;;  %v552_v41 = vmul.f32 %v2073_v21, %v541_v37  ;;  %v580_v49 = vmul.f32 %v2108_v43, %v470_v30  ;;  %v645_v3 = vmul.f32 %v2113_v46, %v531_v39  ;;  %s1586_s28 = scalar_lea.hbm %s1585_s26, 128 }
  0x7d   : > { %v648_v14 = vmul.f32 %v2113_v46, %v554_v44  ;;  %v663_v20 = vadd.f32 %v647_v12, %v630_v10  ;;  %v678_v22 = vmul.f32 %v2115_v47, %v492_v32  ;;  %v679_v23 = vmul.f32 %v2115_v47, %v471_v25  ;;  %p1587_p2 = scmp.ne.s32.totalorder %s1585_s26, %s1586_s28 }
  0x7e   : > { %v579_v48 = vmul.f32 %v2108_v43, %v490_v35  ;;  %v596_v57 = vadd.f32 %v2106_v42, %v580_v49  ;;  %v646_v8 = vmul.f32 %v2113_v46, %v552_v41  ;;  %v472_v26 = vsel %vm469_vm2, %v451_v11, %v461_v17 }
  0x7f   : > { %v632_v28 = vadd.f32 %v616_v63, %v599_v60  ;;  %v696_v32 = vadd.f32 %v680_v24, %v663_v20  ;;  %v712_v25 = vmul.f32 %v2125_v55, %v2052_v5  ;;  %v649_v35 = vmul.f32 %v2113_v46, %v533_v9  ;;  %p1588_p4 = pnand %p1587_p2, %p1950_p8 }
  0x80   : > { %v595_v56 = vadd.f32 %v2106_v42, %v579_v48  ;;  %v629_v2 = vadd.f32 %v613_v54, %v596_v57  ;;  %v713_v37 = vmul.f32 %v2125_v55, %v2055_v6  ;;  %v2165_v38 = vperm.slane %v572_v34, 2  ;;  %v2180_v54 = vld [vmem:[%s2019_s12 + $0x28] sm:$0xff] }
  0x81   : > { %v2167_v11 = vperm.slane %v573_v19, 0  ;;  %v664_v17 = vadd.f32 %v648_v14, %v631_v13  ;;  %v2169_v48 = vperm.slane %v573_v19, 1  ;;  %v681_v49 = vmul.f32 %v2115_v47, %v472_v26  ;;  %p1589_p5 = pneg %p1588_p4 }
  0x82   : > { %v628_v0 = vadd.f32 %v612_v53, %v595_v56  ;;  %v662_v18 = vadd.f32 %v646_v8, %v629_v2  ;;  %v744_v50 = vmul.f32 %v2165_v38, %v532_v40  ;;  %v745_v51 = vmul.f32 %v2165_v38, %v554_v44  ;;  %v2177_v53 = vld [vmem:[%s2019_s12 + $0x20] sm:$0xff] }
  0x83   : > { %v2174_v52 = vperm.slane %v573_v19, 2  ;;  %v729_v34 = vadd.f32 %v713_v37, %v696_v32  ;;  %v777_v56 = vmul.f32 %v2167_v11, %v2090_v33  ;;  %v810_v57 = vmul.f32 %v2169_v48, %v2055_v6 }
  0x84   : > { %v661_v15 = vadd.f32 %v645_v3, %v628_v0  ;;  %v695_v31 = vadd.f32 %v679_v23, %v662_v18  ;;  %v543_v40 = vsel %vm530_vm3, %v522_v36, %v512_v27  ;;  %v778_v60 = vmul.f32 %v2167_v11, %v472_v26 }
  0x85   : > { %v556_v59 = vmul.f32 %v2073_v21, %v543_v40  ;;  %v746_v61 = vmul.f32 %v2165_v38, %v533_v9  ;;  %v811_v33 = vmul.f32 %v2169_v48, %v2059_v7  ;;  %v452_v62 = vrot.slane %v2177_v53, 7 }
  0x86   : > { %v694_v30 = vadd.f32 %v678_v22, %v661_v15  ;;  %v728_v41 = vadd.f32 %v712_v25, %v695_v31  ;;  %v462_v63 = vrot.slane %v2180_v54, 7  ;;  %v843_v2 = vmul.f32 %v2174_v52, %v533_v9 }
  0x87   : > { %v844_v27 = vmul.f32 %v2174_v52, %v556_v59  ;;  %v513_v8 = vrot.slane %v2177_v53, 1  ;;  %v523_v14 = vrot.slane %v2180_v54, 1  ;;  %v2207_v15 = vmul.f32 %v2108_v43, %v472_v26 }
  0x88   : > { %v727_v39 = vadd.f32 %v711_v29, %v694_v30  ;;  %v761_v58 = vadd.f32 %v745_v51, %v728_v41  ;;  %v483_v36 = vsel %vm469_vm2, %v462_v63, %v452_v62  ;;  %v2209_v18 = vadd.f32 %v649_v35, %v632_v28 }
  0x89   : > { %v496_v13 = vmul.f32 %v2064_v16, %v483_v36  ;;  %v697_v9 = vadd.f32 %v681_v49, %v664_v17  ;;  %v762_v19 = vadd.f32 %v746_v61, %v729_v34  ;;  %v534_v23 = vsel %vm530_vm3, %v513_v8, %v523_v14 }
  0x8a   : > { %v760_v44 = vadd.f32 %v744_v50, %v727_v39  ;;  %v794_v3 = vadd.f32 %v778_v60, %v761_v58  ;;  %v714_v24 = vmul.f32 %v2125_v55, %v2059_v7  ;;  %v2216_v29 = vmul.f32 %v2113_v46, %v556_v59  ;;  %v2238_v58 = vld [vmem:[%s2019_s12 + $0x30] sm:$0xff]  ;;  %v2241_v60 = vld [vmem:[%s2019_s12 + $0x38] sm:$0xff] }
  0x8b   : > { %v618_v30 = vmul.f32 %v2111_v45, %v2177_v53  ;;  %v779_v26 = vmul.f32 %v2167_v11, %v496_v13  ;;  %v812_v28 = vmul.f32 %v2169_v48, %v2177_v53  ;;  %v585_v25 = vmul.f32 %v2108_v43, %v496_v13 }
  0x8c   : > { %v793_v0 = vadd.f32 %v777_v56, %v760_v44  ;;  %v827_v12 = vadd.f32 %v811_v33, %v794_v3  ;;  %v544_v35 = vsel %vm530_vm3, %v523_v14, %v513_v8  ;;  %v651_v37 = vmul.f32 %v2113_v46, %v534_v23 }
  0x8d   : > { %v795_v17 = vadd.f32 %v779_v26, %v762_v19  ;;  %v845_v39 = vmul.f32 %v2174_v52, %v534_v23  ;;  %v473_v41 = vsel %vm469_vm2, %v452_v62, %v462_v63  ;;  %v748_v51 = vmul.f32 %v2165_v38, %v534_v23 }
  0x8e   : > { %v826_v10 = vadd.f32 %v810_v57, %v793_v0  ;;  %v860_v22 = vadd.f32 %v844_v27, %v827_v12  ;;  %v730_v34 = vadd.f32 %v714_v24, %v697_v9  ;;  %v2234_v40 = vmul.f32 %v2073_v21, %v544_v35 }
  0x8f   : > { %v828_v57 = vadd.f32 %v812_v28, %v795_v17  ;;  %v747_v44 = vmul.f32 %v2165_v38, %v556_v59  ;;  %v601_v62 = vadd.f32 %v2106_v42, %v585_v25  ;;  %v780_v63 = vmul.f32 %v2167_v11, %v473_v41 }
  0x90   : > { %v859_v20 = vadd.f32 %v843_v2, %v826_v10  ;;  %v892_v32 = vmul.f32 0.044715, %v860_v22  ;;  %v876_v0 = vmul.f32 0.5, %v860_v22  ;;  %v813_v27 = vmul.f32 %v2169_v48, %v2180_v54 }
  0x91   : > { %v861_v2 = vadd.f32 %v845_v39, %v828_v57  ;;  %v763_v3 = vadd.f32 %v747_v44, %v730_v34  ;;  %v453_v59 = vrot.slane %v2238_v58, 7  ;;  %v463_v10 = vrot.slane %v2241_v60, 7 }
  0x92   : > { %v891_v31 = vmul.f32 0.044715, %v859_v20  ;;  %v908_v50 = vmul.f32 %v892_v32, %v860_v22  ;;  %v2231_v56 = vmul.f32 0.5, %v859_v20  ;;  %v586_v14 = vmul.f32 %v2108_v43, %v473_v41 }
  0x93   : > { %v893_v12 = vmul.f32 0.044715, %v861_v2  ;;  %v796_v9 = vadd.f32 %v780_v63, %v763_v3  ;;  %v846_v19 = vmul.f32 %v2174_v52, %v2234_v40  ;;  %v634_v26 = vadd.f32 %v618_v30, %v601_v62 }
  0x94   : > { %v907_v49 = vmul.f32 %v891_v31, %v859_v20  ;;  %v924_v33 = vmul.f32 %v908_v50, %v860_v22  ;;  %v484_v28 = vsel %vm469_vm2, %v463_v10, %v453_v59  ;;  %v514_v32 = vrot.slane %v2238_v58, 1 }
  0x95   : > { %v909_v31 = vmul.f32 %v893_v12, %v861_v2  ;;  %v524_v25 = vrot.slane %v2241_v60, 1  ;;  %v682_v35 = vmul.f32 %v2115_v47, %v496_v13  ;;  %v715_v17 = vmul.f32 %v2125_v55, %v2177_v53 }
  0x96   : > { %v923_v61 = vmul.f32 %v907_v49, %v859_v20  ;;  %v940_v8 = vadd.f32 %v924_v33, %v860_v22  ;;  %v2255_v22 = vmul.f32 %v2064_v16, %v484_v28  ;;  %v2266_v50 = vmul.f32 %v2113_v46, %v2234_v40 }
  0x97   : > { %v925_v30 = vmul.f32 %v909_v31, %v861_v2  ;;  %v683_v34 = vmul.f32 %v2115_v47, %v473_v41  ;;  %v535_v57 = vsel %vm530_vm3, %v514_v32, %v524_v25  ;;  %v698_v13 = vadd.f32 %v682_v35, %v2209_v18 }
  0x98   : > { %v939_v36 = vadd.f32 %v923_v61, %v859_v20  ;;  %v956_v24 = vmul.f32 0.7978846, %v940_v8  ;;  %v829_v20 = vadd.f32 %v813_v27, %v796_v9  ;;  %v587_v49 = vmul.f32 %v2108_v43, %v2255_v22 }
  0x99   : > { %v2272_v44 = vadd.f32 %v651_v37, %v634_v26  ;;  %v941_v61 = vadd.f32 %v925_v30, %v861_v2  ;;  %v2275_v33 = vadd.f32 %v2106_v42, %v586_v14  ;;  %v877_v63 = vmul.f32 0.5, %v861_v2 }
  0x9a   : > { %v955_v23 = vmul.f32 0.7978846, %v939_v36  ;;  %v862_v39 = vadd.f32 %v846_v19, %v829_v20  ;;  %v620_v3 = vmul.f32 %v2111_v45, %v2238_v58  ;;  %v731_v27 = vadd.f32 %v715_v17, %v698_v13 }
  0x9b   : > { %v781_v41 = vmul.f32 %v2167_v11, %v2255_v22  ;;  %v957_v36 = vmul.f32 0.7978846, %v941_v61  ;;  %v603_v12 = vadd.f32 %v2106_v42, %v587_v49  ;;  %v653_v18 = vmul.f32 %v2113_v46, %v535_v57 }
  0x9c   : > { %1418 = vtanh.f32 %v955_v23  ;;  %v894_v62 = vmul.f32 0.044715, %v862_v39  ;;  %v764_v9 = vadd.f32 %v748_v51, %v731_v27  ;;  %v814_v14 = vmul.f32 %v2169_v48, %v2238_v58  ;;  %v2302_v27 = vld [vmem:[%s2019_s12 + $0x48] sm:$0xff] }
  0x9d   : > { %1420 = vtanh.f32 %v956_v24  ;;  %v847_v2 = vmul.f32 %v2174_v52, %v535_v57  ;;  %v600_v19 = vadd.f32 %v2106_v42, %v2207_v15  ;;  %v2290_v28 = vsel %vm469_vm2, %v453_v59, %v463_v10  ;;  %v2299_v10 = vld [vmem:[%s2019_s12 + $0x40] sm:$0xff] }
  0x9e   : > { %v910_v8 = vmul.f32 %v894_v62, %v862_v39  ;;  %1422 = vtanh.f32 %v957_v36  ;;  %v797_v51 = vadd.f32 %v781_v41, %v764_v9  ;;  %v545_v20 = vsel %vm530_vm3, %v524_v25, %v514_v32 }
  0x9f   : > { %v617_v35 = vmul.f32 %v2111_v45, %v2059_v7  ;;  %v636_v30 = vadd.f32 %v620_v3, %v603_v12  ;;  %v750_v49 = vmul.f32 %v2165_v38, %v535_v57  ;;  %v878_v61 = vmul.f32 0.5, %v862_v39 }
  0xa0   : > { %v926_v26 = vmul.f32 %v910_v8, %v862_v39  ;;  %v830_v62 = vadd.f32 %v814_v14, %v797_v51  ;;  %v2306_v41 = vmul.f32 %v2073_v21, %v545_v20  ;;  %v454_v8 = vrot.slane %v2299_v10, 7 }
  0xa1   : > { %v633_v59 = vadd.f32 %v617_v35, %v600_v19  ;;  %v749_v9 = vmul.f32 %v2165_v38, %v2234_v40  ;;  %v515_v40 = vrot.slane %v2299_v10, 1  ;;  %v684_v51 = vmul.f32 %v2115_v47, %v2255_v22 }
  0xa2   : > { %v1419_v37 = vpop.eup %1418  ;;  %v942_v17 = vadd.f32 %v926_v26, %v862_v39  ;;  %v863_v3 = vadd.f32 %v847_v2, %v830_v62  ;;  %v716_v39 = vmul.f32 %v2125_v55, %v2180_v54  ;;  %v782_v2 = vmul.f32 %v2167_v11, %v2290_v28 }
  0xa3   : > { %v1421_v23 = vpop.eup %1420  ;;  %v987_v24 = vadd.f32 1.0, %v1419_v37  ;;  %v717_v20 = vmul.f32 %v2125_v55, %v2238_v58  ;;  %v700_v22 = vadd.f32 %v684_v51, %v2272_v44 }
  0xa4   : > { %v988_v31 = vadd.f32 1.0, %v1421_v23  ;;  %v958_v25 = vmul.f32 0.7978846, %v942_v17  ;;  %v1423_v36 = vpop.eup %1422 }
  0xa5   : > { %v1003_v15 = vmul.f32 %v987_v24, %v2231_v56  ;;  %v588_v56 = vmul.f32 %v2108_v43, %v2290_v28  ;;  %v989_v12 = vadd.f32 1.0, %v1423_v36 }
  0xa6   : > { %v1004_v13 = vmul.f32 %v988_v31, %v876_v0  ;;  %v666_v0 = vadd.f32 %v2216_v29, %v633_v59  ;;  %1424 = vtanh.f32 %v958_v25  ;;  %v895_v29 = vmul.f32 0.044715, %v863_v3 }
  0xa7   : > { %v1019_v32 = vadd.f32 %v1003_v15, %v2049_v4  ;;  %v2319_v4 = vadd.f32 %v653_v18, %v636_v30  ;;  %v2327_v14 = vadd.f32 %v2106_v42, %v588_v56  ;;  %v815_v18 = vmul.f32 %v2169_v48, %v2241_v60 }
  0xa8   : > { %v1020_v57 = vadd.f32 %v1004_v13, %v2052_v5  ;;  %v464_v5 = vrot.slane %v2302_v27, 7  ;;  %v699_v37 = vadd.f32 %v683_v34, %v666_v0  ;;  %v1005_v23 = vmul.f32 %v989_v12, %v877_v63 }
  0xa9   : > { %1035 = vst [vmem:[%s2316_s2] sm:$0xff] %v1019_v32  ;;  %v911_v24 = vmul.f32 %v895_v29, %v863_v3  ;;  %v525_v31 = vrot.slane %v2302_v27, 1  ;;  %v848_v13 = vmul.f32 %v2174_v52, %v2306_v41  ;;  %v622_v59 = vmul.f32 %v2111_v45, %v2299_v10 }
  0xaa   : > { %1036 = vst [vmem:[%s2316_s2 + $0x8] sm:$0xff] %v1020_v57  ;;  %v485_v19 = vsel %vm469_vm2, %v464_v5, %v454_v8  ;;  %v732_v26 = vadd.f32 %v716_v39, %v699_v37  ;;  %v1021_v35 = vadd.f32 %v1005_v23, %v2055_v6  ;;  %v733_v57 = vadd.f32 %v717_v20, %v700_v22 }
  0xab   : > { %v500_v34 = vmul.f32 %v2064_v16, %v485_v19  ;;  %v927_v15 = vmul.f32 %v911_v24, %v863_v3  ;;  %v536_v62 = vsel %vm530_vm3, %v515_v40, %v525_v31  ;;  %v816_v39 = vmul.f32 %v2169_v48, %v2299_v10 }
  0xac   : > { %v765_v17 = vadd.f32 %v749_v9, %v732_v26  ;;  %v1425_v30 = vpop.eup %1424  ;;  %1037 = vst [vmem:[%s2316_s2 + $0x10] sm:$0xff] %v1021_v35  ;;  %v2358_v36 = vsel %vm469_vm2, %v454_v8, %v464_v5  ;;  %v655_v37 = vmul.f32 %v2113_v46, %v536_v62  ;;  %v546_v19 = vsel %vm530_vm3, %v525_v31, %v515_v40  ;;  %v2373_v40 = vld [vmem:[%s2019_s12 + $0x50] sm:$0xff]  ;;  %v2384_v35 = vld [vmem:[%s2019_s12 + $0x58] sm:$0xff] }
  0xad   : > { %v589_v63 = vmul.f32 %v2108_v43, %v500_v34  ;;  %v990_v32 = vadd.f32 1.0, %v1425_v30  ;;  %v943_v25 = vadd.f32 %v927_v15, %v863_v3  ;;  %v783_v0 = vmul.f32 %v2167_v11, %v500_v34 }
  0xae   : > { %v798_v6 = vadd.f32 %v782_v2, %v765_v17  ;;  %v766_v2 = vadd.f32 %v750_v49, %v733_v57  ;;  %v619_v23 = vmul.f32 %v2111_v45, %v2180_v54  ;;  %v685_v5 = vmul.f32 %v2115_v47, %v2290_v28 }
  0xaf   : > { %v605_v56 = vadd.f32 %v2106_v42, %v589_v63  ;;  %v1006_v12 = vmul.f32 %v990_v32, %v878_v61  ;;  %v959_v29 = vmul.f32 0.7978846, %v943_v25  ;;  %v590_v61 = vmul.f32 %v2108_v43, %v2358_v36 }
  0xb0   : > { %v831_v44 = vadd.f32 %v815_v18, %v798_v6  ;;  %v799_v18 = vadd.f32 %v783_v0, %v766_v2  ;;  %v849_v49 = vmul.f32 %v2174_v52, %v536_v62  ;;  %v635_v26 = vadd.f32 %v619_v23, %v2275_v33 }
  0xb1   : > { %v638_v9 = vadd.f32 %v622_v59, %v605_v56  ;;  %v1022_v24 = vadd.f32 %v1006_v12, %v2059_v7  ;;  %1426 = vtanh.f32 %v959_v29  ;;  %v879_v31 = vmul.f32 0.5, %v863_v3 }
  0xb2   : > { %v864_v8 = vadd.f32 %v848_v13, %v831_v44  ;;  %v2378_v7 = vmul.f32 %v2113_v46, %v2306_v41  ;;  %v2381_v20 = vmul.f32 %v2073_v21, %v546_v19  ;;  %v752_v28 = vmul.f32 %v2165_v38, %v536_v62 }
  0xb3   : > { %1038 = vst [vmem:[%s2316_s2 + $0x18] sm:$0xff] %v1022_v24  ;;  %v832_v15 = vadd.f32 %v816_v39, %v799_v18  ;;  %v668_v17 = vadd.f32 %v2266_v50, %v635_v26  ;;  %v718_v33 = vmul.f32 %v2125_v55, %v2241_v60  ;;  %v2390_v3 = vadd.f32 %v655_v37, %v638_v9 }
  0xb4   : > { %v896_v51 = vmul.f32 0.044715, %v864_v8  ;;  %v2393_v30 = vadd.f32 %v2106_v42, %v590_v61  ;;  %v455_v13 = vrot.slane %v2373_v40, 7  ;;  %v751_v32 = vmul.f32 %v2165_v38, %v2306_v41 }
  0xb5   : > { %v865_v59 = vadd.f32 %v849_v49, %v832_v15  ;;  %v701_v22 = vadd.f32 %v685_v5, %v668_v17  ;;  %v465_v62 = vrot.slane %v2384_v35, 7  ;;  %v2401_v6 = vmul.f32 %v2113_v46, %v2381_v20 }
  0xb6   : > { %v912_v63 = vmul.f32 %v896_v51, %v864_v8  ;;  %v784_v56 = vmul.f32 %v2167_v11, %v2358_v36  ;;  %v686_v57 = vmul.f32 %v2115_v47, %v500_v34  ;;  %v817_v29 = vmul.f32 %v2169_v48, %v2302_v27 }
  0xb7   : > { %v1427_v25 = vpop.eup %1426  ;;  %v897_v39 = vmul.f32 0.044715, %v865_v59  ;;  %v734_v12 = vadd.f32 %v718_v33, %v701_v22  ;;  %v850_v44 = vmul.f32 %v2174_v52, %v2381_v20  ;;  %v486_v37 = vsel %vm469_vm2, %v465_v62, %v455_v13 }
  0xb8   : > { %v928_v50 = vmul.f32 %v912_v63, %v864_v8  ;;  %v991_v0 = vadd.f32 1.0, %v1427_v25  ;;  %v702_v9 = vadd.f32 %v686_v57, %v2319_v4  ;;  %v2414_v34 = vmul.f32 %v2064_v16, %v486_v37 }
  0xb9   : > { %v913_v19 = vmul.f32 %v897_v39, %v865_v59  ;;  %v767_v23 = vadd.f32 %v751_v32, %v734_v12  ;;  %v516_v61 = vrot.slane %v2373_v40, 1  ;;  %v526_v5 = vrot.slane %v2384_v35, 1 }
  0xba   : > { %v944_v41 = vadd.f32 %v928_v50, %v864_v8  ;;  %v1007_v2 = vmul.f32 %v991_v0, %v879_v31  ;;  %v719_v18 = vmul.f32 %v2125_v55, %v2299_v10  ;;  %v591_v4 = vmul.f32 %v2108_v43, %v2414_v34 }
  0xbb   : > { %v929_v26 = vmul.f32 %v913_v19, %v865_v59  ;;  %v800_v51 = vadd.f32 %v784_v56, %v767_v23  ;;  %v880_v31 = vmul.f32 0.5, %v864_v8  ;;  %v785_v17 = vmul.f32 %v2167_v11, %v2414_v34 }
  0xbc   : > { %v960_v24 = vmul.f32 0.7978846, %v944_v41  ;;  %v1023_v49 = vadd.f32 %v1007_v2, %v2177_v53  ;;  %v735_v15 = vadd.f32 %v719_v18, %v702_v9  ;;  %v537_v22 = vsel %vm530_vm3, %v516_v61, %v526_v5 }
  0xbd   : > { %v945_v33 = vadd.f32 %v929_v26, %v865_v59  ;;  %v833_v63 = vadd.f32 %v817_v29, %v800_v51  ;;  %v624_v53 = vmul.f32 %v2111_v45, %v2373_v40  ;;  %v607_v32 = vadd.f32 %v2106_v42, %v591_v4 }
  0xbe   : > { %1428 = vtanh.f32 %v960_v24  ;;  %1039 = vst [vmem:[%s2316_s2 + $0x20] sm:$0xff] %v1023_v49  ;;  %v768_v25 = vadd.f32 %v752_v28, %v735_v15  ;;  %v818_v8 = vmul.f32 %v2169_v48, %v2373_v40  ;;  %v621_v50 = vmul.f32 %v2111_v45, %v2241_v60  ;;  %v2449_v24 = vld [vmem:[%s2019_s12 + $0x60] sm:$0xff]  ;;  %v2457_v49 = vld [vmem:[%s2019_s12 + $0x68] sm:$0xff] }
  0xbf   : > { %v881_v56 = vmul.f32 0.5, %v865_v59  ;;  %v961_v57 = vmul.f32 0.7978846, %v945_v33  ;;  %v687_v0 = vmul.f32 %v2115_v47, %v2358_v36  ;;  %v866_v39 = vadd.f32 %v850_v44, %v833_v63 }
  0xc0   : > { %v801_v12 = vadd.f32 %v785_v17, %v768_v25  ;;  %v851_v29 = vmul.f32 %v2174_v52, %v537_v22  ;;  %v547_v41 = vsel %vm530_vm3, %v526_v5, %v516_v61  ;;  %v637_v28 = vadd.f32 %v621_v50, %v2327_v14 }
  0xc1   : > { %1430 = vtanh.f32 %v961_v57  ;;  %v898_v37 = vmul.f32 0.044715, %v866_v39  ;;  %v657_v9 = vmul.f32 %v2113_v46, %v537_v22  ;;  %v476_v59 = vsel %vm469_vm2, %v455_v13, %v465_v62 }
  0xc2   : > { %v640_v19 = vadd.f32 %v624_v53, %v607_v32  ;;  %v2445_v36 = vmul.f32 %v2165_v38, %v537_v22  ;;  %v834_v44 = vadd.f32 %v818_v8, %v801_v12  ;;  %v670_v23 = vadd.f32 %v2378_v7, %v637_v28 }
  0xc3   : > { %v914_v5 = vmul.f32 %v898_v37, %v866_v39  ;;  %v2452_v14 = vmul.f32 %v2073_v21, %v547_v41  ;;  %v720_v18 = vmul.f32 %v2125_v55, %v2302_v27  ;;  %v592_v62 = vmul.f32 %v2108_v43, %v476_v59 }
  0xc4   : > { %v1429_v2 = vpop.eup %1428  ;;  %v867_v13 = vadd.f32 %v851_v29, %v834_v44  ;;  %v703_v26 = vadd.f32 %v687_v0, %v670_v23  ;;  %v753_v51 = vmul.f32 %v2165_v38, %v2381_v20  ;;  %v786_v15 = vmul.f32 %v2167_v11, %v476_v59 }
  0xc5   : > { %v992_v61 = vadd.f32 1.0, %v1429_v2  ;;  %v930_v4 = vmul.f32 %v914_v5, %v866_v39  ;;  %v456_v17 = vrot.slane %v2449_v24, 7  ;;  %v819_v22 = vmul.f32 %v2169_v48, %v2384_v35 }
  0xc6   : > { %v899_v33 = vmul.f32 0.044715, %v867_v13  ;;  %v736_v63 = vadd.f32 %v720_v18, %v703_v26  ;;  %v466_v53 = vrot.slane %v2457_v49, 7  ;;  %v517_v20 = vrot.slane %v2449_v24, 1 }
  0xc7   : > { %v1008_v7 = vmul.f32 %v992_v61, %v880_v31  ;;  %v1431_v32 = vpop.eup %1430  ;;  %v946_v8 = vadd.f32 %v930_v4, %v866_v39  ;;  %v527_v31 = vrot.slane %v2457_v49, 1  ;;  %v689_v41 = vmul.f32 %v2115_v47, %v476_v59 }
  0xc8   : > { %v993_v50 = vadd.f32 1.0, %v1431_v32  ;;  %v915_v57 = vmul.f32 %v899_v33, %v867_v13  ;;  %v769_v0 = vadd.f32 %v753_v51, %v736_v63  ;;  %v487_v12 = vsel %vm469_vm2, %v466_v53, %v456_v17 }
  0xc9   : > { %v1024_v25 = vadd.f32 %v1008_v7, %v2180_v54  ;;  %v962_v29 = vmul.f32 0.7978846, %v946_v8  ;;  %v852_v28 = vmul.f32 %v2174_v52, %v2452_v14  ;;  %v2477_v54 = vmul.f32 %v2064_v16, %v487_v12 }
  0xca   : > { %v1009_v37 = vmul.f32 %v993_v50, %v881_v56  ;;  %v931_v2 = vmul.f32 %v915_v57, %v867_v13  ;;  %v802_v44 = vadd.f32 %v786_v15, %v769_v0  ;;  %v538_v23 = vsel %vm530_vm3, %v517_v20, %v527_v31 }
  0xcb   : > { %1040 = vst [vmem:[%s2316_s2 + $0x28] sm:$0xff] %v1024_v25  ;;  %1432 = vtanh.f32 %v962_v29  ;;  %v593_v61 = vmul.f32 %v2108_v43, %v2477_v54  ;;  %v688_v59 = vmul.f32 %v2115_v47, %v2414_v34  ;;  %v721_v5 = vmul.f32 %v2125_v55, %v2373_v40 }
  0xcc   : > { %v1025_v18 = vadd.f32 %v1009_v37, %v2238_v58  ;;  %v947_v26 = vadd.f32 %v931_v2, %v867_v13  ;;  %v835_v56 = vadd.f32 %v819_v22, %v802_v44  ;;  %v626_v51 = vmul.f32 %v2111_v45, %v2449_v24  ;;  %v2515_v2 = vld [vmem:[%s2019_s12 + $0x70] sm:$0xff] }
  0xcd   : > { %v882_v7 = vmul.f32 0.5, %v866_v39  ;;  %v673_v4 = vadd.f32 %v657_v9, %v640_v19  ;;  %v609_v15 = vadd.f32 %v2106_v42, %v593_v61  ;;  %v704_v33 = vadd.f32 %v688_v59, %v2390_v3  ;;  %v2522_v61 = vld [vmem:[%s2019_s12 + $0x78] sm:$0xff]  ;;  %s2793_s12 = smov %s2792_s24 }
  0xce   : > { %1041 = vst [vmem:[%s2316_s2 + $0x30] sm:$0xff] %v1025_v18  ;;  %v963_v63 = vmul.f32 0.7978846, %v947_v26  ;;  %v2494_v34 = vadd.f32 %v2106_v42, %v592_v62  ;;  %v2498_v32 = vmul.f32 %v2113_v46, %v2452_v14  ;;  %v868_v58 = vadd.f32 %v852_v28, %v835_v56  ;;  %s1590_s23 = scalar_lea.hbm %s2793_s12, 512  ;;  %p1591_p0 = scmp.lt.s32.totalorder %s1585_s26, %s2793_s12 }
  0xcf   : > { %v883_v22 = vmul.f32 0.5, %v867_v13  ;;  %v659_v25 = vmul.f32 %v2113_v46, %v538_v23  ;;  %v737_v39 = vadd.f32 %v721_v5, %v704_v33  ;;  %v787_v9 = vmul.f32 %v2167_v11, %v2477_v54  ;;  %p1592_p3 = scmp.lt.s32.totalorder %s1590_s23, %s1586_s28 }
  0xd0   : > { %1434 = vtanh.f32 %v963_v63  ;;  %v900_v3 = vmul.f32 0.044715, %v868_v58  ;;  %v642_v19 = vadd.f32 %v626_v51, %v609_v15  ;;  %v477_v62 = vsel %vm469_vm2, %v456_v17, %v466_v53 }
  0xd1   : > { %v1433_v8 = vpop.eup %1432  ;;  %v770_v50 = vadd.f32 %v2445_v36, %v737_v39  ;;  %v820_v13 = vmul.f32 %v2169_v48, %v2449_v24  ;;  %v548_v57 = vsel %vm530_vm3, %v527_v31, %v517_v20  ;;  %v623_v0 = vmul.f32 %v2111_v45, %v2302_v27  ;;  %p1593_p7 = por %p1592_p3, %p1591_p0 }
  0xd2   : > { %v994_v12 = vadd.f32 1.0, %v1433_v8  ;;  %v916_v29 = vmul.f32 %v900_v3, %v868_v58  ;;  %v756_v28 = vmul.f32 %v2165_v38, %v538_v23  ;;  %v853_v37 = vmul.f32 %v2174_v52, %v538_v23 }
  0xd3   : > { %v2517_v17 = vmul.f32 0.5, %v868_v58  ;;  %v803_v36 = vadd.f32 %v787_v9, %v770_v50  ;;  %v594_v53 = vmul.f32 %v2108_v43, %v477_v62  ;;  %v639_v44 = vadd.f32 %v623_v0, %v2393_v30  ;;  %p1594_p13 = pnand %p1593_p7, %p1589_p5 }
  0xd4   : > { %v1010_v20 = vmul.f32 %v994_v12, %v882_v7  ;;  %v932_v31 = vmul.f32 %v916_v29, %v868_v58  ;;  %v2524_v59 = vadd.f32 %v659_v25, %v642_v19  ;;  %v2527_v5 = vmul.f32 %v2073_v21, %v548_v57 }
  0xd5   : > { %v836_v23 = vadd.f32 %v820_v13, %v803_v36  ;;  %v672_v18 = vadd.f32 %v2401_v6, %v639_v44  ;;  %v722_v26 = vmul.f32 %v2125_v55, %v2384_v35  ;;  %v457_v43 = vrot.slane %v2515_v2, 7 }
  0xd6   : > { %v1435_v56 = vpop.eup %1434  ;;  %v1026_v30 = vadd.f32 %v1010_v20, %v2241_v60  ;;  %v948_v51 = vadd.f32 %v932_v31, %v868_v58  ;;  %v755_v7 = vmul.f32 %v2165_v38, %v2452_v14  ;;  %v467_v15 = vrot.slane %v2522_v61, 7 }
  0xd7   : > { %v995_v33 = vadd.f32 1.0, %v1435_v56  ;;  %v869_v63 = vadd.f32 %v853_v37, %v836_v23  ;;  %v705_v25 = vadd.f32 %v689_v41, %v672_v18  ;;  %v788_v39 = vmul.f32 %v2167_v11, %v477_v62 }
  0xd8   : > { %1042 = vst [vmem:[%s2316_s2 + $0x38] sm:$0xff] %v1026_v30  ;;  %v964_v6 = vmul.f32 0.7978846, %v948_v51  ;;  %v488_v9 = vsel %vm469_vm2, %v467_v15, %v457_v43  ;;  %v690_v3 = vmul.f32 %v2115_v47, %v2477_v54  ;;  %v723_v60 = vmul.f32 %v2125_v55, %v2449_v24 }
  0xd9   : > { %v1011_v58 = vmul.f32 %v995_v33, %v883_v22  ;;  %v901_v14 = vmul.f32 0.044715, %v869_v63  ;;  %v738_v19 = vadd.f32 %v722_v26, %v705_v25  ;;  %v518_v41 = vrot.slane %v2515_v2, 1 }
  0xda   : > { %1436 = vtanh.f32 %v964_v6  ;;  %v506_v8 = vmul.f32 %v2064_v16, %v488_v9  ;;  %v528_v50 = vrot.slane %v2522_v61, 1  ;;  %v706_v13 = vadd.f32 %v690_v3, %v673_v4 }
  0xdb   : > { %v1027_v57 = vadd.f32 %v1011_v58, %v2299_v10  ;;  %v917_v0 = vmul.f32 %v901_v14, %v869_v63  ;;  %v771_v54 = vadd.f32 %v755_v7, %v738_v19  ;;  %v821_v12 = vmul.f32 %v2169_v48, %v2457_v49  ;;  %v423_v14 = vld [vmem:[%s351_s17 + $0x8] sm:$0xff] }
  0xdc   : > { %v2552_v22 = vadd.f32 %v2106_v42, %v594_v53  ;;  %v539_v29 = vsel %vm530_vm3, %v518_v41, %v528_v50  ;;  %v739_v37 = vadd.f32 %v723_v60, %v706_v13  ;;  %v789_v36 = vmul.f32 %v2167_v11, %v506_v8 }
  0xdd   : > { %1043 = vst [vmem:[%s2316_s2 + $0x40] sm:$0xff] %v1027_v57  ;;  %v933_v44 = vmul.f32 %v917_v0, %v869_v63  ;;  %v691_v4 = vmul.f32 %v2115_v47, %v477_v62  ;;  %v804_v10 = vadd.f32 %v788_v39, %v771_v54  ;;  %v854_v20 = vmul.f32 %v2174_v52, %v2527_v5 }
  0xde   : > { %v885_v31 = vmul.f32 0.5, %v869_v63  ;;  %v772_v23 = vadd.f32 %v756_v28, %v739_v37  ;;  %v822_v42 = vmul.f32 %v2169_v48, %v2515_v2  ;;  %v625_v53 = vmul.f32 %v2111_v45, %v2384_v35 }
  0xdf   : > { %v949_v18 = vadd.f32 %v933_v44, %v869_v63  ;;  %v837_v26 = vadd.f32 %v821_v12, %v804_v10  ;;  %v758_v56 = vmul.f32 %v2165_v38, %v539_v29  ;;  %v549_v62 = vsel %vm530_vm3, %v528_v50, %v518_v41 }
  0xe0   : > { %v1437_v30 = vpop.eup %1436  ;;  %v692_v51 = vmul.f32 %v2115_v47, %v506_v8  ;;  %v805_v7 = vadd.f32 %v789_v36, %v772_v23  ;;  %v855_v28 = vmul.f32 %v2174_v52, %v539_v29  ;;  %v641_v33 = vadd.f32 %v625_v53, %v2494_v34  ;;  %v422_v34 = vld [vmem:[%s351_s17] sm:$0xff] }
  0xe1   : > { %v996_v25 = vadd.f32 1.0, %v1437_v30  ;;  %v965_v63 = vmul.f32 0.7978846, %v949_v18  ;;  %v2574_v39 = vadd.f32 %v854_v20, %v837_v26  ;;  %v478_v6 = vsel %vm469_vm2, %v457_v43, %v467_v15 }
  0xe2   : > { %v838_v9 = vadd.f32 %v822_v42, %v805_v7  ;;  %v2579_v3 = vmul.f32 %v2073_v21, %v549_v62  ;;  %v674_v60 = vadd.f32 %v2498_v32, %v641_v33  ;;  %v724_v58 = vmul.f32 %v2125_v55, %v2457_v49 }
  0xe3   : > { %v1012_v19 = vmul.f32 %v996_v25, %v2517_v17  ;;  %1438 = vtanh.f32 %v965_v63  ;;  %v902_v41 = vmul.f32 0.044715, %v2574_v39  ;;  %v757_v43 = vmul.f32 %v2165_v38, %v2527_v5 }
  0xe4   : > { %v2592_v15 = vadd.f32 %v855_v28, %v838_v9  ;;  %v707_v8 = vadd.f32 %v691_v4, %v674_v60  ;;  %v431_v32 = vstv %s430_s11  ;;  %v708_v50 = vadd.f32 %v692_v51, %v2524_v59 }
  0xe5   : > { %v1028_v13 = vadd.f32 %v1012_v19, %v2302_v27  ;;  %v918_v57 = vmul.f32 %v902_v41, %v2574_v39  ;;  %v432_v0 = vmul.f32 %v431_v32, %v422_v34  ;;  %v2597_v54 = vmul.f32 %v431_v32, %v423_v14 }
  0xe6   : > { %v903_v17 = vmul.f32 0.044715, %v2592_v15  ;;  %v740_v12 = vadd.f32 %v724_v58, %v707_v8  ;;  %v790_v29 = vmul.f32 %v2167_v11, %v478_v6  ;;  %v725_v37 = vmul.f32 %v2125_v55, %v2515_v2 }
  0xe7   : > { %1044 = vst [vmem:[%s2316_s2 + $0x48] sm:$0xff] %v1028_v13  ;;  %v934_v36 = vmul.f32 %v918_v57, %v2574_v39  ;;  %v823_v59 = vmul.f32 %v2169_v48, %v2522_v61  ;;  %v458_v27 = vrot.slane %v432_v0, 7  ;;  %v468_v44 = vrot.slane %v2597_v54, 7 }
  0xe8   : > { %v919_v4 = vmul.f32 %v903_v17, %v2592_v15  ;;  %v773_v10 = vadd.f32 %v757_v43, %v740_v12  ;;  %v856_v20 = vmul.f32 %v2174_v52, %v2579_v3  ;;  %v741_v23 = vadd.f32 %v725_v37, %v708_v50 }
  0xe9   : > { %v1439_v42 = vpop.eup %1438  ;;  %v950_v53 = vadd.f32 %v934_v36, %v2574_v39  ;;  %v489_v18 = vsel %vm469_vm2, %v468_v44, %v458_v27  ;;  %v519_v26 = vrot.slane %v432_v0, 1  ;;  %v529_v62 = vrot.slane %v2597_v54, 1 }
  0xea   : > { %v997_v30 = vadd.f32 1.0, %v1439_v42  ;;  %v935_v51 = vmul.f32 %v919_v4, %v2592_v15  ;;  %v806_v7 = vadd.f32 %v790_v29, %v773_v10  ;;  %v508_v28 = vmul.f32 %v2064_v16, %v489_v18 }
  0xeb   : > { %v966_v33 = vmul.f32 0.7978846, %v950_v53  ;;  %v540_v25 = vsel %vm530_vm3, %v519_v26, %v529_v62  ;;  %v774_v63 = vadd.f32 %v758_v56, %v741_v23  ;;  %v824_v9 = vmul.f32 %v2169_v48, %v432_v0 }
  0xec   : > { %v1013_v60 = vmul.f32 %v997_v30, %v885_v31  ;;  %v951_v58 = vadd.f32 %v935_v51, %v2592_v15  ;;  %v839_v34 = vadd.f32 %v823_v59, %v806_v7  ;;  %v791_v14 = vmul.f32 %v2167_v11, %v508_v28 }
  0xed   : > { %v660_v19 = vmul.f32 %v2113_v46, %v2527_v5  ;;  %1440 = vtanh.f32 %v966_v33  ;;  %v857_v16 = vmul.f32 %v2174_v52, %v540_v25  ;;  %v627_v41 = vmul.f32 %v2111_v45, %v2457_v49 }
  0xee   : > { %v1029_v56 = vadd.f32 %v1013_v60, %v2373_v40  ;;  %v967_v43 = vmul.f32 0.7978846, %v951_v58  ;;  %v872_v8 = vadd.f32 %v856_v20, %v839_v34  ;;  %v807_v32 = vadd.f32 %v791_v14, %v774_v63 }
  0xef   : > { %v693_v31 = vmul.f32 %v2115_v47, %v478_v6  ;;  %v643_v50 = vadd.f32 %v627_v41, %v2552_v22  ;;  %v886_v46 = vmul.f32 0.5, %v2574_v39  ;;  %v726_v0 = vmul.f32 %v2125_v55, %v2522_v61 }
  0xf0   : > { %1045 = vst [vmem:[%s2316_s2 + $0x50] sm:$0xff] %v1029_v56  ;;  %1442 = vtanh.f32 %v967_v43  ;;  %v904_v13 = vmul.f32 0.044715, %v872_v8  ;;  %v840_v57 = vadd.f32 %v824_v9, %v807_v32  ;;  %v479_v40 = vsel %vm469_vm2, %v458_v27, %v468_v44 }
  0xf1   : > { %v676_v5 = vadd.f32 %v660_v19, %v643_v50  ;;  %v550_v47 = vsel %vm530_vm3, %v529_v62, %v519_v26  ;;  %v759_v22 = vmul.f32 %v2165_v38, %v2579_v3  ;;  %v887_v36 = vmul.f32 0.5, %v2592_v15 }
  0xf2   : > { %v920_v45 = vmul.f32 %v904_v13, %v872_v8  ;;  %v873_v17 = vadd.f32 %v857_v16, %v840_v57  ;;  %v570_v55 = vmul.f32 %v2073_v21, %v550_v47  ;;  %v792_v4 = vmul.f32 %v2167_v11, %v479_v40 }
  0xf3   : > { %v1441_v6 = vpop.eup %1440  ;;  %v709_v12 = vadd.f32 %v693_v31, %v676_v5  ;;  %v825_v38 = vmul.f32 %v2169_v48, %v2597_v54  ;;  %v888_v48 = vmul.f32 0.5, %v872_v8 }
  0xf4   : > { %v998_v29 = vadd.f32 1.0, %v1441_v6  ;;  %v936_v37 = vmul.f32 %v920_v45, %v872_v8  ;;  %v905_v39 = vmul.f32 0.044715, %v873_v17  ;;  %v858_v18 = vmul.f32 %v2174_v52, %v570_v55 }
  0xf5   : > { %v742_v59 = vadd.f32 %v726_v0, %v709_v12  ;;  %v889_v52 = vmul.f32 0.5, %v873_v17 }
  0xf6   : > { %v1443_v27 = vpop.eup %1442  ;;  %v1014_v44 = vmul.f32 %v998_v29, %v886_v46  ;;  %v952_v1 = vadd.f32 %v936_v37, %v872_v8  ;;  %v921_v10 = vmul.f32 %v905_v39, %v873_v17 }
  0xf7   : > { %v999_v20 = vadd.f32 1.0, %v1443_v27  ;;  %v775_v23 = vadd.f32 %v759_v22, %v742_v59 }
  0xf8   : > { %v1030_v3 = vadd.f32 %v1014_v44, %v2384_v35  ;;  %v968_v42 = vmul.f32 0.7978846, %v952_v1  ;;  %v937_v15 = vmul.f32 %v921_v10, %v873_v17 }
  0xf9   : > { %v1015_v53 = vmul.f32 %v999_v20, %v887_v36  ;;  %v808_v21 = vadd.f32 %v792_v4, %v775_v23 }
  0xfa   : > { %1046 = vst [vmem:[%s2316_s2 + $0x58] sm:$0xff] %v1030_v3  ;;  %1444 = vtanh.f32 %v968_v42  ;;  %v953_v11 = vadd.f32 %v937_v15, %v873_v17 }
  0xfb   : > { %v1031_v26 = vadd.f32 %v1015_v53, %v2449_v24  ;;  %v841_v62 = vadd.f32 %v825_v38, %v808_v21 }
  0xfc   : > { %v969_v30 = vmul.f32 0.7978846, %v953_v11 }
  0xfd   : > { %1047 = vst [vmem:[%s2316_s2 + $0x60] sm:$0xff] %v1031_v26  ;;  %v874_v51 = vadd.f32 %v858_v18, %v841_v62 }
  0xfe   : > { %1446 = vtanh.f32 %v969_v30 }
  0xff   : > { %v906_v35 = vmul.f32 0.044715, %v874_v51  ;;  %v890_v19 = vmul.f32 0.5, %v874_v51 }
 0x100   : > { %v1445_v54 = vpop.eup %1444 }
 0x101   : > { %v1000_v7 = vadd.f32 1.0, %v1445_v54  ;;  %v922_v28 = vmul.f32 %v906_v35, %v874_v51 }
 0x103   : > { %v1016_v33 = vmul.f32 %v1000_v7, %v888_v48  ;;  %v938_v25 = vmul.f32 %v922_v28, %v874_v51 }
 0x104   : > { %v1447_v63 = vpop.eup %1446 }
 0x105   : > { %v1032_v24 = vadd.f32 %v1016_v33, %v2457_v49  ;;  %v1001_v9 = vadd.f32 1.0, %v1447_v63  ;;  %v954_v60 = vadd.f32 %v938_v25, %v874_v51 }
 0x107   : > { %1048 = vst [vmem:[%s2316_s2 + $0x68] sm:$0xff] %v1032_v24  ;;  %v1017_v58 = vmul.f32 %v1001_v9, %v889_v52  ;;  %v970_v34 = vmul.f32 0.7978846, %v954_v60 }
 0x109   : > { %v1033_v14 = vadd.f32 %v1017_v58, %v2515_v2  ;;  %1448 = vtanh.f32 %v970_v34 }
 0x10b   : > { %1049 = vst [vmem:[%s2316_s2 + $0x70] sm:$0xff] %v1033_v14 }
 0x10f   : > { %v1449_v49 = vpop.eup %1448 }
 0x110   : > { %v1002_v16 = vadd.f32 1.0, %v1449_v49 }
 0x112   : > { %v1018_v41 = vmul.f32 %v1002_v16, %v890_v19 }
 0x114   : > { %v1034_v56 = vadd.f32 %v1018_v41, %v2522_v61 }
 0x116   : > { %1050 = vst [vmem:[%s2316_s2 + $0x78] sm:$0xff] %v1034_v56 }
 0x117   : > { %1597 = shalt.err (!%p1594_p13)
}
 0x118   : > { %s1736_s4 = smov 128   ;;  %s1737_s15 = smov 8  }
 0x119   : > { %1273 = dma.vmem_to_hbm [thread:$0]  (%p1950_p8), %s1068_s16, 2048, %s1070_s13, %s1052_s7, %s1736_s4, %s1736_s4, %s1737_s15  }
 0x11a PF: > { %s2795_s2 = sld [smem:[#allocation18_spill]]  ;;  %p1296_p10 = scmp.ge.s32.totalorder %s1728_s6, 2 }
 0x11c   : > { %p1290_p1 = pnand %p1296_p10, %p1954_p6 }
 0x11e   : > { %p1291_p9 = pneg %p1290_p1 }
 0x120   : > { %s1084_s27 = sand.u32 1, %s2795_s2  }
 0x121   : > { %s1085_s1 = scalar_lea.sflag [#allocation4], %s1084_s27 }
 0x122   : > { %1671 = dma.done.wait (%p1291_p9), %s1085_s1, 2048  }
 0x123   : > { %1673 = vsyncadd (%p1291_p9), %s1085_s1, 4294965248  ;;  %s25_s6 = sadd.s32 1, %s1728_s6   ;;  %s2798_s5 = smov %s1996_s18 }
 0x124   : > { %p2678_p11 = scmp.ge.s32.totalorder %s25_s6, 6   ;;  %s2799_s10 = sld [smem:[#allocation17_spill]] }
 0x125   : > { %s2800_s23 = sld [smem:[#allocation27_spill]]  ;;  %s2808_s18 = smov %s1680_s19 }
 0x126   : > { %s2801_s3 = sld [smem:[#allocation19_spill]]  ;;  %s2809_s19 = smov %s1684_s20 }
 0x127   : > { %s2802_s26 = sld [smem:[#allocation28_spill]]  ;;  %s2810_s20 = smov %s2798_s5 }
 0x128   : > { %s2803_s27 = sld [smem:[#allocation22_spill]]  ;;  %s2811_s21 = smov %s1692_s22 }
 0x129   : > { %s2804_s28 = sld [smem:[#allocation23_spill]]  ;;  %s2813_s24 = smov %s1704_s25 }
 0x12a   : > { %s2805_s29 = sld [smem:[#allocation24_spill]]  ;;  %s2812_s22 = smov %s2799_s10 }
 0x12b   : > { %s2806_s30 = sld [smem:[#allocation25_spill]]  ;;  %24 = sbr.rel (!%p2678_p11) target bundleno = 20 (0x14), region = 113 }
 0x12c   : > { %s2814_s25 = smov %s2801_s3 }
 0x130   :  { %1091 = vsyncpa [#allocation3], 1 }
 0x131   :  { %1093 = vsyncpa [#allocation3 + $0x1], 1 }
 0x132   :  { %1094 = vsyncpa [#allocation6], 1 }
 0x133   :  { %1096 = vsyncpa [#allocation6 + $0x1], 1 }
 0x134   :  { %1097 = vsyncpa [#allocation9], 1 }
 0x135   :  { %1098 = vsyncpa [#allocation4], 1 }
 0x136   :  { %1100 = vsyncpa [#allocation4 + $0x1], 1 }

</bundles_post_ra>
